<compile_context>
chip_gen: v7x
topology: tpu7x:2x2x1
jax: 0.10.0
libtpu: 0.0.40
codegen_flags: <defaults>
</compile_context>

<pallas_src>
import functools

import jax
import jax.numpy as jnp
from jax import lax
from jax.experimental import pallas as pl
from jax.experimental.pallas import tpu as pltpu

EPS = 1e-5  # PyTorch GroupNorm default eps


# ---------------- in-kernel helpers (lists of (TB, H*W) lane-dense tiles) ---------------


def _group_norm_1group(chans, gamma, beta):
    """GroupNorm with a single group: normalize each sample over all C*H*W.

    chans: list of (TB, L) per-channel tiles (batch on sublanes, spatial on lanes).
    gamma/beta: callables i -> SMEM scalar.
    Single fused stats pass (sum + sum-of-squares); apply folded into one
    per-channel scale and one offset (2 full-tile VALU ops per channel).
    """
    C = len(chans)
    L = chans[0].shape[-1]
    inv_n = 1.0 / float(C * L)
    s = None
    ss = None
    for c in chans:
        cs = jnp.sum(c, axis=-1, keepdims=True)          # (TB, 1)
        cq = jnp.sum(c * c, axis=-1, keepdims=True)      # (TB, 1)
        s = cs if s is None else s + cs
        ss = cq if ss is None else ss + cq
    mu = s * inv_n
    var = jnp.maximum(ss * inv_n - mu * mu, 0.0)
    inv_std = lax.rsqrt(var + EPS)                       # (TB, 1)
    outs = []
    for i, c in enumerate(chans):
        sc = inv_std * gamma(i)                          # (TB, 1)
        off = beta(i) - mu * sc                          # (TB, 1)
        outs.append(c * sc + off)                        # 2 full-tile ops
    return outs


def _conv3x3_same(chans, w, bias, cout, W, masks):
    """3x3 'same' conv on lane-flattened tiles.

    Taps are built per (ci, row-offset, col-offset) with pltpu.roll (XLU) and a
    {0,1} boundary-mask multiply, then immediately accumulated into every output
    channel and dropped -- only ~3 shifted tiles + cout accumulators stay live.
    w: callable (co, ci, di, dj) -> SMEM scalar;  bias: callable co -> scalar or None.
    """
    cin = len(chans)
    row_lo, row_hi, col_lo, col_hi = masks               # (1, L) f32 {0, 1}
    L = chans[0].shape[-1]

    def _shift(a, d):
        # out[p] = a[p + d]   (lane rotation; mask multiply zeroes the wrap)
        return pltpu.roll(a, (-d) % L, axis=1)

    accs = [None] * cout
    for ci in range(cin):
        x = chans[ci]
        for oi in (-1, 0, 1):
            if oi == -1:
                row = _shift(x, -W) * row_lo
            elif oi == 1:
                row = _shift(x, W) * row_hi
            else:
                row = x
            for oj in (-1, 0, 1):
                if oj == -1:
                    tap = _shift(row, -1) * col_lo
                elif oj == 1:
                    tap = _shift(row, 1) * col_hi
                else:
                    tap = row
                for co in range(cout):
                    wv = w(co, ci, oi + 1, oj + 1)
                    accs[co] = wv * tap if accs[co] is None else accs[co] + wv * tap
    if bias is not None:
        accs = [a + bias(co) for co, a in enumerate(accs)]
    return accs


# ---------------------------------- kernel ---------------------------------------------


def _norm_block_kernel(inc, c_exp, outc, H, W, x_ref, f_ref, p_ref, out_ref):
    L = H * W

    # Static offsets into the packed SMEM parameter vector.
    o_g1 = 0
    o_b1 = o_g1 + inc
    o_w1 = o_b1 + inc
    o_bc1 = o_w1 + c_exp * inc * 9
    o_g2 = o_bc1 + c_exp
    o_be2 = o_g2 + c_exp
    o_w2 = o_be2 + c_exp
    o_al = o_w2 + outc * c_exp * 9
    o_lam = o_al + inc
    o_tau = o_lam + 1

    g1 = lambda i: p_ref[o_g1 + i]
    be1 = lambda i: p_ref[o_b1 + i]
    w1 = lambda co, ci, di, dj: p_ref[o_w1 + ((co * inc + ci) * 3 + di) * 3 + dj]
    bc1 = lambda co: p_ref[o_bc1 + co]
    g2 = lambda i: p_ref[o_g2 + i]
    be2 = lambda i: p_ref[o_be2 + i]
    w2 = lambda co, ci, di, dj: p_ref[o_w2 + ((co * c_exp + ci) * 3 + di) * 3 + dj]
    alpha = lambda c: p_ref[o_al + c]

    # Boundary masks depend only on the lane index: build once at (1, L) as
    # {0,1} f32 and let the mask multiplies broadcast over the batch sublanes.
    lane = lax.broadcasted_iota(jnp.int32, (1, L), dimension=1)
    col = lane % W
    f32 = lambda m: m.astype(jnp.float32)
    masks = (f32(lane >= W),             # row offset -1 valid
             f32(lane < (H - 1) * W),    # row offset +1 valid
             f32(col >= 1),              # col offset -1 valid
             f32(col <= W - 2))          # col offset +1 valid

    # norm1 -> conv1 (+bias) -> prox_F (soft threshold, learnable lam)
    h = _group_norm_1group([x_ref[c] for c in range(inc)], g1, be1)
    h = _conv3x3_same(h, w1, bc1, c_exp, W, masks)
    lam = p_ref[o_lam]
    h = [a - jnp.clip(a, -lam, lam) for a in h]          # soft-threshold, 3 tile ops

    # norm2 -> conv2 (no bias)
    h = _group_norm_1group(h, g2, be2)
    h = _conv3x3_same(h, w2, None, outc, W, masks)

    # residual with learnable per-channel alpha, then prox_G against f
    tau = p_ref[o_tau]
    inv_1p_tau = 1.0 / (1.0 + tau)
    for c in range(outc):
        r = x_ref[c] + alpha(c) * h[c]                   # fresh load of x (low liveness)
        out_ref[c] = (r + tau * f_ref[c]) * inv_1p_tau   # dense (TB, L) store


# ---------------------------------- wrapper --------------------------------------------


def _pick_batch_block(n_pad):
    """n_pad is a multiple of 8.  Keep TB small (8-16, register-resident body)
    and the grid with >=2 steps whenever possible (v7x megacore sharding)."""
    if n_pad % 16 == 0 and n_pad // 16 >= 2:
        return 16
    return 8


def normalization_block(xk, f, params, *, K=3):
    assert K == 3, "kernel implements the module-default 3x3 'same' convolutions"
    N, inc, H, W = xk.shape
    c_exp = params["w1"].shape[0]
    outc = params["w2"].shape[0]
    assert outc == inc, "residual path requires outc == inc"
    L = H * W

    # Pad batch up to a multiple of 8 (full sublanes).  Padded samples are
    # independent (GroupNorm stats are per-sample) and are dropped at the end.
    n_pad = ((N + 7) // 8) * 8
    if n_pad != N:
        pad = ((0, n_pad - N), (0, 0), (0, 0), (0, 0))
        xk_p, f_p = jnp.pad(xk, pad), jnp.pad(f, pad)
    else:
        xk_p, f_p = xk, f
    TB = _pick_batch_block(n_pad)

    # Lane-dense layout plumbing (outside the kernel): (N,C,H,W) -> (C, N, H*W).
    x_t = jnp.transpose(xk_p.reshape(n_pad, inc, L), (1, 0, 2)).astype(jnp.float32)
    f_t = jnp.transpose(f_p.reshape(n_pad, inc, L), (1, 0, 2)).astype(jnp.float32)

    # All small per-channel parameters packed into one flat SMEM vector.
    pvec = jnp.concatenate([
        params["gamma1"].reshape(-1), params["beta1"].reshape(-1),
        params["w1"].reshape(-1), params["b1"].reshape(-1),
        params["gamma2"].reshape(-1), params["beta2"].reshape(-1),
        params["w2"].reshape(-1),
        params["alpha"].reshape(-1),
        params["lam"].reshape(-1), params["tau"].reshape(-1),
    ]).astype(jnp.float32)

    kern = functools.partial(_norm_block_kernel, inc, c_exp, outc, H, W)

    img_in_spec = pl.BlockSpec((inc, TB, L), lambda b: (0, b, 0))
    out_spec = pl.BlockSpec((outc, TB, L), lambda b: (0, b, 0))
    smem_spec = pl.BlockSpec(memory_space=pltpu.MemorySpace.SMEM)

    out_t = pl.pallas_call(
        kern,
        grid=(n_pad // TB,),
        in_specs=[img_in_spec, img_in_spec, smem_spec],
        out_specs=out_spec,
        out_shape=jax.ShapeDtypeStruct((outc, n_pad, L), jnp.float32),
        compiler_params=pltpu.CompilerParams(dimension_semantics=("parallel",)),
    )(x_t, f_t, pvec)

    out = jnp.transpose(out_t[:, :N, :], (1, 0, 2)).reshape(N, outc, H, W)
    return out, f


# ---------------------------------- pure-JAX reference ---------------------------------


def reference(xk, f, params):
    def gn(x, gamma, beta):
        mu = x.mean(axis=(1, 2, 3), keepdims=True)
        var = ((x - mu) ** 2).mean(axis=(1, 2, 3), keepdims=True)
        xn = (x - mu) * lax.rsqrt(var + EPS)
        return xn * gamma[None, :, None, None] + beta[None, :, None, None]

    def conv(x, w, b=None):
        y = lax.conv_general_dilated(x, w, (1, 1), "SAME",
                                     dimension_numbers=("NCHW", "OIHW", "NCHW"))
        return y if b is None else y + b[None, :, None, None]

    out = gn(xk, params["gamma1"], params["beta1"])
    out = conv(out, params["w1"], params["b1"])
    lam = params["lam"][0]
    out = jnp.maximum(out - lam, 0.0) - jnp.maximum(-out - lam, 0.0)
    out = gn(out, params["gamma2"], params["beta2"])
    out = conv(out, params["w2"])
    out = xk + params["alpha"][None, :, None, None] * out
    tau = params["tau"][0]
    out = (out + tau * f) / (1.0 + tau)
    return out, f


# ---------------------------------- main ------------------------------------------------


if __name__ == "__main__":
    N, INC, CEXP, OUTC, H, W, K = 2, 1, 2, 1, 16, 16, 3

    key = jax.random.PRNGKey(0)
    ks = jax.random.split(key, 10)
    xk = jax.random.normal(ks[0], (N, INC, H, W), jnp.float32)
    f = jax.random.normal(ks[1], (N, INC, H, W), jnp.float32)

    # Deterministic synthetic parameters (shapes per module __init__).
    # alpha is nn.Parameter(zeros) in the module; nonzero here so the conv path
    # actually contributes to the output under test.
    params = dict(
        gamma1=1.0 + 0.1 * jax.random.normal(ks[2], (INC,), jnp.float32),
        beta1=0.1 * jax.random.normal(ks[3], (INC,), jnp.float32),
        w1=jax.random.normal(ks[4], (CEXP, INC, K, K), jnp.float32) / (K * K),
        b1=0.1 * jax.random.normal(ks[5], (CEXP,), jnp.float32),
        gamma2=1.0 + 0.1 * jax.random.normal(ks[6], (CEXP,), jnp.float32),
        beta2=0.1 * jax.random.normal(ks[7], (CEXP,), jnp.float32),
        w2=jax.random.normal(ks[8], (OUTC, CEXP, K, K), jnp.float32) / (K * K),
        alpha=0.5 * jnp.ones((INC,), jnp.float32),
        lam=jnp.array([0.1], jnp.float32),       # Prox_l1 threshold
        tau=jnp.array([1e-5], jnp.float32),      # Prox_l2_learnable tau
    )

    out, f_out = normalization_block(xk, f, params)
    out = jax.block_until_ready(out)

    ref_out, _ = reference(xk, f, params)
    err = float(jnp.max(jnp.abs(out - ref_out)))
    assert jnp.allclose(out, ref_out, atol=1e-4, rtol=1e-4), err
    print("KERNEL_OK")
</pallas_src>

<mosaic_0001>
module attributes {stable_mosaic.version = 11 : i64} {
  func.func @_norm_block_kernel(%arg0: i32, %arg1: memref<1x8x256xf32, #tpu.memory_space<vmem>>, %arg2: memref<1x8x256xf32, #tpu.memory_space<vmem>>, %arg3: memref<47xf32, #tpu.memory_space<smem>>, %arg4: memref<1x8x256xf32, #tpu.memory_space<vmem>>) attributes {dimension_semantics = [#tpu.dimension_semantics<parallel>], iteration_bounds = array<i64: 1>, scalar_prefetch = 0 : i64, scratch_operands = 0 : i64, tpu.core_type = #tpu.core_type<tc>, window_params = [{transform_indices = @transform_0, window_bounds = array<i64: 1, 8, 256>}, {transform_indices = @transform_1, window_bounds = array<i64: 1, 8, 256>}, {transform_indices = @transform_2, window_bounds = array<i64: 47>}, {transform_indices = @transform_3, window_bounds = array<i64: 1, 8, 256>}]} {
    %0 = tpu.iota {dimensions = array<i32: 1>} : vector<1x256xi32>
    %c16_i32 = arith.constant 16 : i32
    %c0_i32 = arith.constant 0 : i32
    %1 = arith.cmpi eq, %c16_i32, %c0_i32 : i32
    %c1_i32 = arith.constant 1 : i32
    %2 = arith.select %1, %c1_i32, %c16_i32 : i32
    %3 = vector.broadcast %2 : i32 to vector<1x256xi32>
    %4 = arith.remsi %0, %3 : vector<1x256xi32>
    %c0_i32_0 = arith.constant 0 : i32
    %5 = vector.broadcast %c0_i32_0 : i32 to vector<1x256xi32>
    %6 = arith.cmpi ne, %4, %5 : vector<1x256xi32>
    %c0_i32_1 = arith.constant 0 : i32
    %7 = vector.broadcast %c0_i32_1 : i32 to vector<1x256xi32>
    %8 = arith.cmpi slt, %4, %7 : vector<1x256xi32>
    %c0_i32_2 = arith.constant 0 : i32
    %9 = arith.cmpi slt, %2, %c0_i32_2 : i32
    %10 = vector.broadcast %9 : i1 to vector<1x256xi1>
    %11 = vector.broadcast %10 : vector<1x256xi1> to vector<1x256xi1>
    %12 = arith.xori %8, %11 : vector<1x256xi1>
    %13 = arith.andi %12, %6 : vector<1x256xi1>
    %14 = vector.broadcast %2 : i32 to vector<1x256xi32>
    %15 = arith.addi %4, %14 : vector<1x256xi32>
    %16 = arith.select %13, %15, %4 : vector<1x256xi1>, vector<1x256xi32>
    %c16_i32_3 = arith.constant 16 : i32
    %17 = vector.broadcast %c16_i32_3 : i32 to vector<1x256xi32>
    %18 = arith.cmpi sge, %0, %17 : vector<1x256xi32>
    %19 = arith.extui %18 : vector<1x256xi1> to vector<1x256xi32>
    %20 = arith.sitofp %19 : vector<1x256xi32> to vector<1x256xf32>
    %c240_i32 = arith.constant 240 : i32
    %21 = vector.broadcast %c240_i32 : i32 to vector<1x256xi32>
    %22 = arith.cmpi slt, %0, %21 : vector<1x256xi32>
    %23 = arith.extui %22 : vector<1x256xi1> to vector<1x256xi32>
    %24 = arith.sitofp %23 : vector<1x256xi32> to vector<1x256xf32>
    %c1_i32_4 = arith.constant 1 : i32
    %25 = vector.broadcast %c1_i32_4 : i32 to vector<1x256xi32>
    %26 = arith.cmpi sge, %16, %25 : vector<1x256xi32>
    %27 = arith.extui %26 : vector<1x256xi1> to vector<1x256xi32>
    %28 = arith.sitofp %27 : vector<1x256xi32> to vector<1x256xf32>
    %c14_i32 = arith.constant 14 : i32
    %29 = vector.broadcast %c14_i32 : i32 to vector<1x256xi32>
    %30 = arith.cmpi sle, %16, %29 : vector<1x256xi32>
    %31 = arith.extui %30 : vector<1x256xi1> to vector<1x256xi32>
    %32 = arith.sitofp %31 : vector<1x256xi32> to vector<1x256xf32>
    %c0 = arith.constant 0 : index
    %c0_5 = arith.constant 0 : index
    %c0_6 = arith.constant 0 : index
    %33 = vector.load %arg1[%c0, %c0_5, %c0_6] : memref<1x8x256xf32, #tpu.memory_space<vmem>>, vector<1x8x256xf32>
    %34 = vector.shape_cast %33 : vector<1x8x256xf32> to vector<8x256xf32>
    %cst = arith.constant dense<0.000000e+00> : vector<8xf32>
    %35 = vector.multi_reduction <add>, %34, %cst [1] : vector<8x256xf32> to vector<8xf32>
    %36 = vector.shape_cast %35 : vector<8xf32> to vector<8x1xf32>
    %37 = arith.mulf %34, %34 : vector<8x256xf32>
    %cst_7 = arith.constant dense<0.000000e+00> : vector<8xf32>
    %38 = vector.multi_reduction <add>, %37, %cst_7 [1] : vector<8x256xf32> to vector<8xf32>
    %39 = vector.shape_cast %38 : vector<8xf32> to vector<8x1xf32>
    %cst_8 = arith.constant 3.906250e-03 : f32
    %40 = vector.broadcast %cst_8 : f32 to vector<8x1xf32>
    %41 = arith.mulf %36, %40 : vector<8x1xf32>
    %cst_9 = arith.constant 3.906250e-03 : f32
    %42 = vector.broadcast %cst_9 : f32 to vector<8x1xf32>
    %43 = arith.mulf %39, %42 : vector<8x1xf32>
    %44 = arith.mulf %41, %41 : vector<8x1xf32>
    %45 = arith.subf %43, %44 : vector<8x1xf32>
    %cst_10 = arith.constant 0.000000e+00 : f32
    %46 = vector.broadcast %cst_10 : f32 to vector<8x1xf32>
    %47 = arith.maximumf %45, %46 : vector<8x1xf32>
    %cst_11 = arith.constant 9.99999974E-6 : f32
    %48 = vector.broadcast %cst_11 : f32 to vector<8x1xf32>
    %49 = arith.addf %47, %48 : vector<8x1xf32>
    %50 = math.rsqrt %49 : vector<8x1xf32>
    %c0_12 = arith.constant 0 : index
    %51 = memref.load %arg3[%c0_12] : memref<47xf32, #tpu.memory_space<smem>>
    %52 = vector.broadcast %51 : f32 to vector<8x1xf32>
    %53 = arith.mulf %50, %52 : vector<8x1xf32>
    %c1 = arith.constant 1 : index
    %54 = memref.load %arg3[%c1] : memref<47xf32, #tpu.memory_space<smem>>
    %55 = arith.mulf %41, %53 : vector<8x1xf32>
    %56 = vector.broadcast %54 : f32 to vector<8x1xf32>
    %57 = arith.subf %56, %55 : vector<8x1xf32>
    %58 = vector.broadcast %53 : vector<8x1xf32> to vector<8x256xf32>
    %59 = arith.mulf %34, %58 : vector<8x256xf32>
    %60 = vector.broadcast %57 : vector<8x1xf32> to vector<8x256xf32>
    %61 = arith.addf %59, %60 : vector<8x256xf32>
    %c16_i32_13 = arith.constant 16 : i32
    %62 = tpu.dynamic_rotate %61 by %c16_i32_13 dim 1 : vector<8x256xf32>, i32 -> vector<8x256xf32>
    %63 = vector.broadcast %20 : vector<1x256xf32> to vector<8x256xf32>
    %64 = arith.mulf %62, %63 : vector<8x256xf32>
    %c1_i32_14 = arith.constant 1 : i32
    %65 = tpu.dynamic_rotate %64 by %c1_i32_14 dim 1 : vector<8x256xf32>, i32 -> vector<8x256xf32>
    %66 = vector.broadcast %28 : vector<1x256xf32> to vector<8x256xf32>
    %67 = arith.mulf %65, %66 : vector<8x256xf32>
    %c2 = arith.constant 2 : index
    %68 = memref.load %arg3[%c2] : memref<47xf32, #tpu.memory_space<smem>>
    %69 = vector.broadcast %68 : f32 to vector<8x256xf32>
    %70 = arith.mulf %69, %67 : vector<8x256xf32>
    %c11 = arith.constant 11 : index
    %71 = memref.load %arg3[%c11] : memref<47xf32, #tpu.memory_space<smem>>
    %72 = vector.broadcast %71 : f32 to vector<8x256xf32>
    %73 = arith.mulf %72, %67 : vector<8x256xf32>
    %c3 = arith.constant 3 : index
    %74 = memref.load %arg3[%c3] : memref<47xf32, #tpu.memory_space<smem>>
    %75 = vector.broadcast %74 : f32 to vector<8x256xf32>
    %76 = arith.mulf %75, %64 : vector<8x256xf32>
    %77 = arith.addf %70, %76 : vector<8x256xf32>
    %c12 = arith.constant 12 : index
    %78 = memref.load %arg3[%c12] : memref<47xf32, #tpu.memory_space<smem>>
    %79 = vector.broadcast %78 : f32 to vector<8x256xf32>
    %80 = arith.mulf %79, %64 : vector<8x256xf32>
    %81 = arith.addf %73, %80 : vector<8x256xf32>
    %c255_i32 = arith.constant 255 : i32
    %82 = tpu.dynamic_rotate %64 by %c255_i32 dim 1 : vector<8x256xf32>, i32 -> vector<8x256xf32>
    %83 = vector.broadcast %32 : vector<1x256xf32> to vector<8x256xf32>
    %84 = arith.mulf %82, %83 : vector<8x256xf32>
    %c4 = arith.constant 4 : index
    %85 = memref.load %arg3[%c4] : memref<47xf32, #tpu.memory_space<smem>>
    %86 = vector.broadcast %85 : f32 to vector<8x256xf32>
    %87 = arith.mulf %86, %84 : vector<8x256xf32>
    %88 = arith.addf %77, %87 : vector<8x256xf32>
    %c13 = arith.constant 13 : index
    %89 = memref.load %arg3[%c13] : memref<47xf32, #tpu.memory_space<smem>>
    %90 = vector.broadcast %89 : f32 to vector<8x256xf32>
    %91 = arith.mulf %90, %84 : vector<8x256xf32>
    %92 = arith.addf %81, %91 : vector<8x256xf32>
    %c1_i32_15 = arith.constant 1 : i32
    %93 = tpu.dynamic_rotate %61 by %c1_i32_15 dim 1 : vector<8x256xf32>, i32 -> vector<8x256xf32>
    %94 = vector.broadcast %28 : vector<1x256xf32> to vector<8x256xf32>
    %95 = arith.mulf %93, %94 : vector<8x256xf32>
    %c5 = arith.constant 5 : index
    %96 = memref.load %arg3[%c5] : memref<47xf32, #tpu.memory_space<smem>>
    %97 = vector.broadcast %96 : f32 to vector<8x256xf32>
    %98 = arith.mulf %97, %95 : vector<8x256xf32>
    %99 = arith.addf %88, %98 : vector<8x256xf32>
    %c14 = arith.constant 14 : index
    %100 = memref.load %arg3[%c14] : memref<47xf32, #tpu.memory_space<smem>>
    %101 = vector.broadcast %100 : f32 to vector<8x256xf32>
    %102 = arith.mulf %101, %95 : vector<8x256xf32>
    %103 = arith.addf %92, %102 : vector<8x256xf32>
    %c6 = arith.constant 6 : index
    %104 = memref.load %arg3[%c6] : memref<47xf32, #tpu.memory_space<smem>>
    %105 = vector.broadcast %104 : f32 to vector<8x256xf32>
    %106 = arith.mulf %105, %61 : vector<8x256xf32>
    %107 = arith.addf %99, %106 : vector<8x256xf32>
    %c15 = arith.constant 15 : index
    %108 = memref.load %arg3[%c15] : memref<47xf32, #tpu.memory_space<smem>>
    %109 = vector.broadcast %108 : f32 to vector<8x256xf32>
    %110 = arith.mulf %109, %61 : vector<8x256xf32>
    %111 = arith.addf %103, %110 : vector<8x256xf32>
    %c255_i32_16 = arith.constant 255 : i32
    %112 = tpu.dynamic_rotate %61 by %c255_i32_16 dim 1 : vector<8x256xf32>, i32 -> vector<8x256xf32>
    %113 = vector.broadcast %32 : vector<1x256xf32> to vector<8x256xf32>
    %114 = arith.mulf %112, %113 : vector<8x256xf32>
    %c7 = arith.constant 7 : index
    %115 = memref.load %arg3[%c7] : memref<47xf32, #tpu.memory_space<smem>>
    %116 = vector.broadcast %115 : f32 to vector<8x256xf32>
    %117 = arith.mulf %116, %114 : vector<8x256xf32>
    %118 = arith.addf %107, %117 : vector<8x256xf32>
    %c16 = arith.constant 16 : index
    %119 = memref.load %arg3[%c16] : memref<47xf32, #tpu.memory_space<smem>>
    %120 = vector.broadcast %119 : f32 to vector<8x256xf32>
    %121 = arith.mulf %120, %114 : vector<8x256xf32>
    %122 = arith.addf %111, %121 : vector<8x256xf32>
    %c240_i32_17 = arith.constant 240 : i32
    %123 = tpu.dynamic_rotate %61 by %c240_i32_17 dim 1 : vector<8x256xf32>, i32 -> vector<8x256xf32>
    %124 = vector.broadcast %24 : vector<1x256xf32> to vector<8x256xf32>
    %125 = arith.mulf %123, %124 : vector<8x256xf32>
    %c1_i32_18 = arith.constant 1 : i32
    %126 = tpu.dynamic_rotate %125 by %c1_i32_18 dim 1 : vector<8x256xf32>, i32 -> vector<8x256xf32>
    %127 = vector.broadcast %28 : vector<1x256xf32> to vector<8x256xf32>
    %128 = arith.mulf %126, %127 : vector<8x256xf32>
    %c8 = arith.constant 8 : index
    %129 = memref.load %arg3[%c8] : memref<47xf32, #tpu.memory_space<smem>>
    %130 = vector.broadcast %129 : f32 to vector<8x256xf32>
    %131 = arith.mulf %130, %128 : vector<8x256xf32>
    %132 = arith.addf %118, %131 : vector<8x256xf32>
    %c17 = arith.constant 17 : index
    %133 = memref.load %arg3[%c17] : memref<47xf32, #tpu.memory_space<smem>>
    %134 = vector.broadcast %133 : f32 to vector<8x256xf32>
    %135 = arith.mulf %134, %128 : vector<8x256xf32>
    %136 = arith.addf %122, %135 : vector<8x256xf32>
    %c9 = arith.constant 9 : index
    %137 = memref.load %arg3[%c9] : memref<47xf32, #tpu.memory_space<smem>>
    %138 = vector.broadcast %137 : f32 to vector<8x256xf32>
    %139 = arith.mulf %138, %125 : vector<8x256xf32>
    %140 = arith.addf %132, %139 : vector<8x256xf32>
    %c18 = arith.constant 18 : index
    %141 = memref.load %arg3[%c18] : memref<47xf32, #tpu.memory_space<smem>>
    %142 = vector.broadcast %141 : f32 to vector<8x256xf32>
    %143 = arith.mulf %142, %125 : vector<8x256xf32>
    %144 = arith.addf %136, %143 : vector<8x256xf32>
    %c255_i32_19 = arith.constant 255 : i32
    %145 = tpu.dynamic_rotate %125 by %c255_i32_19 dim 1 : vector<8x256xf32>, i32 -> vector<8x256xf32>
    %146 = vector.broadcast %32 : vector<1x256xf32> to vector<8x256xf32>
    %147 = arith.mulf %145, %146 : vector<8x256xf32>
    %c10 = arith.constant 10 : index
    %148 = memref.load %arg3[%c10] : memref<47xf32, #tpu.memory_space<smem>>
    %149 = vector.broadcast %148 : f32 to vector<8x256xf32>
    %150 = arith.mulf %149, %147 : vector<8x256xf32>
    %151 = arith.addf %140, %150 : vector<8x256xf32>
    %c19 = arith.constant 19 : index
    %152 = memref.load %arg3[%c19] : memref<47xf32, #tpu.memory_space<smem>>
    %153 = vector.broadcast %152 : f32 to vector<8x256xf32>
    %154 = arith.mulf %153, %147 : vector<8x256xf32>
    %155 = arith.addf %144, %154 : vector<8x256xf32>
    %c20 = arith.constant 20 : index
    %156 = memref.load %arg3[%c20] : memref<47xf32, #tpu.memory_space<smem>>
    %157 = vector.broadcast %156 : f32 to vector<8x256xf32>
    %158 = arith.addf %151, %157 : vector<8x256xf32>
    %c21 = arith.constant 21 : index
    %159 = memref.load %arg3[%c21] : memref<47xf32, #tpu.memory_space<smem>>
    %160 = vector.broadcast %159 : f32 to vector<8x256xf32>
    %161 = arith.addf %155, %160 : vector<8x256xf32>
    %c45 = arith.constant 45 : index
    %162 = memref.load %arg3[%c45] : memref<47xf32, #tpu.memory_space<smem>>
    %cst_20 = arith.constant 0.000000e+00 : f32
    %163 = arith.subf %cst_20, %162 : f32
    %164 = vector.broadcast %163 : f32 to vector<8x256xf32>
    %165 = arith.maximumf %164, %158 : vector<8x256xf32>
    %166 = vector.broadcast %162 : f32 to vector<8x256xf32>
    %167 = arith.minimumf %166, %165 : vector<8x256xf32>
    %168 = arith.subf %158, %167 : vector<8x256xf32>
    %cst_21 = arith.constant 0.000000e+00 : f32
    %169 = arith.subf %cst_21, %162 : f32
    %170 = vector.broadcast %169 : f32 to vector<8x256xf32>
    %171 = arith.maximumf %170, %161 : vector<8x256xf32>
    %172 = vector.broadcast %162 : f32 to vector<8x256xf32>
    %173 = arith.minimumf %172, %171 : vector<8x256xf32>
    %174 = arith.subf %161, %173 : vector<8x256xf32>
    %cst_22 = arith.constant dense<0.000000e+00> : vector<8xf32>
    %175 = vector.multi_reduction <add>, %168, %cst_22 [1] : vector<8x256xf32> to vector<8xf32>
    %176 = vector.shape_cast %175 : vector<8xf32> to vector<8x1xf32>
    %177 = arith.mulf %168, %168 : vector<8x256xf32>
    %cst_23 = arith.constant dense<0.000000e+00> : vector<8xf32>
    %178 = vector.multi_reduction <add>, %177, %cst_23 [1] : vector<8x256xf32> to vector<8xf32>
    %179 = vector.shape_cast %178 : vector<8xf32> to vector<8x1xf32>
    %cst_24 = arith.constant dense<0.000000e+00> : vector<8xf32>
    %180 = vector.multi_reduction <add>, %174, %cst_24 [1] : vector<8x256xf32> to vector<8xf32>
    %181 = vector.shape_cast %180 : vector<8xf32> to vector<8x1xf32>
    %182 = arith.mulf %174, %174 : vector<8x256xf32>
    %cst_25 = arith.constant dense<0.000000e+00> : vector<8xf32>
    %183 = vector.multi_reduction <add>, %182, %cst_25 [1] : vector<8x256xf32> to vector<8xf32>
    %184 = vector.shape_cast %183 : vector<8xf32> to vector<8x1xf32>
    %185 = arith.addf %176, %181 : vector<8x1xf32>
    %186 = arith.addf %179, %184 : vector<8x1xf32>
    %cst_26 = arith.constant 0.001953125 : f32
    %187 = vector.broadcast %cst_26 : f32 to vector<8x1xf32>
    %188 = arith.mulf %185, %187 : vector<8x1xf32>
    %cst_27 = arith.constant 0.001953125 : f32
    %189 = vector.broadcast %cst_27 : f32 to vector<8x1xf32>
    %190 = arith.mulf %186, %189 : vector<8x1xf32>
    %191 = arith.mulf %188, %188 : vector<8x1xf32>
    %192 = arith.subf %190, %191 : vector<8x1xf32>
    %cst_28 = arith.constant 0.000000e+00 : f32
    %193 = vector.broadcast %cst_28 : f32 to vector<8x1xf32>
    %194 = arith.maximumf %192, %193 : vector<8x1xf32>
    %cst_29 = arith.constant 9.99999974E-6 : f32
    %195 = vector.broadcast %cst_29 : f32 to vector<8x1xf32>
    %196 = arith.addf %194, %195 : vector<8x1xf32>
    %197 = math.rsqrt %196 : vector<8x1xf32>
    %c22 = arith.constant 22 : index
    %198 = memref.load %arg3[%c22] : memref<47xf32, #tpu.memory_space<smem>>
    %199 = vector.broadcast %198 : f32 to vector<8x1xf32>
    %200 = arith.mulf %197, %199 : vector<8x1xf32>
    %c24 = arith.constant 24 : index
    %201 = memref.load %arg3[%c24] : memref<47xf32, #tpu.memory_space<smem>>
    %202 = arith.mulf %188, %200 : vector<8x1xf32>
    %203 = vector.broadcast %201 : f32 to vector<8x1xf32>
    %204 = arith.subf %203, %202 : vector<8x1xf32>
    %205 = vector.broadcast %200 : vector<8x1xf32> to vector<8x256xf32>
    %206 = arith.mulf %168, %205 : vector<8x256xf32>
    %207 = vector.broadcast %204 : vector<8x1xf32> to vector<8x256xf32>
    %208 = arith.addf %206, %207 : vector<8x256xf32>
    %c23 = arith.constant 23 : index
    %209 = memref.load %arg3[%c23] : memref<47xf32, #tpu.memory_space<smem>>
    %210 = vector.broadcast %209 : f32 to vector<8x1xf32>
    %211 = arith.mulf %197, %210 : vector<8x1xf32>
    %c25 = arith.constant 25 : index
    %212 = memref.load %arg3[%c25] : memref<47xf32, #tpu.memory_space<smem>>
    %213 = arith.mulf %188, %211 : vector<8x1xf32>
    %214 = vector.broadcast %212 : f32 to vector<8x1xf32>
    %215 = arith.subf %214, %213 : vector<8x1xf32>
    %216 = vector.broadcast %211 : vector<8x1xf32> to vector<8x256xf32>
    %217 = arith.mulf %174, %216 : vector<8x256xf32>
    %218 = vector.broadcast %215 : vector<8x1xf32> to vector<8x256xf32>
    %219 = arith.addf %217, %218 : vector<8x256xf32>
    %c16_i32_30 = arith.constant 16 : i32
    %220 = tpu.dynamic_rotate %208 by %c16_i32_30 dim 1 : vector<8x256xf32>, i32 -> vector<8x256xf32>
    %221 = vector.broadcast %20 : vector<1x256xf32> to vector<8x256xf32>
    %222 = arith.mulf %220, %221 : vector<8x256xf32>
    %c1_i32_31 = arith.constant 1 : i32
    %223 = tpu.dynamic_rotate %222 by %c1_i32_31 dim 1 : vector<8x256xf32>, i32 -> vector<8x256xf32>
    %224 = vector.broadcast %28 : vector<1x256xf32> to vector<8x256xf32>
    %225 = arith.mulf %223, %224 : vector<8x256xf32>
    %c26 = arith.constant 26 : index
    %226 = memref.load %arg3[%c26] : memref<47xf32, #tpu.memory_space<smem>>
    %227 = vector.broadcast %226 : f32 to vector<8x256xf32>
    %228 = arith.mulf %227, %225 : vector<8x256xf32>
    %c27 = arith.constant 27 : index
    %229 = memref.load %arg3[%c27] : memref<47xf32, #tpu.memory_space<smem>>
    %230 = vector.broadcast %229 : f32 to vector<8x256xf32>
    %231 = arith.mulf %230, %222 : vector<8x256xf32>
    %232 = arith.addf %228, %231 : vector<8x256xf32>
    %c255_i32_32 = arith.constant 255 : i32
    %233 = tpu.dynamic_rotate %222 by %c255_i32_32 dim 1 : vector<8x256xf32>, i32 -> vector<8x256xf32>
    %234 = vector.broadcast %32 : vector<1x256xf32> to vector<8x256xf32>
    %235 = arith.mulf %233, %234 : vector<8x256xf32>
    %c28 = arith.constant 28 : index
    %236 = memref.load %arg3[%c28] : memref<47xf32, #tpu.memory_space<smem>>
    %237 = vector.broadcast %236 : f32 to vector<8x256xf32>
    %238 = arith.mulf %237, %235 : vector<8x256xf32>
    %239 = arith.addf %232, %238 : vector<8x256xf32>
    %c1_i32_33 = arith.constant 1 : i32
    %240 = tpu.dynamic_rotate %208 by %c1_i32_33 dim 1 : vector<8x256xf32>, i32 -> vector<8x256xf32>
    %241 = vector.broadcast %28 : vector<1x256xf32> to vector<8x256xf32>
    %242 = arith.mulf %240, %241 : vector<8x256xf32>
    %c29 = arith.constant 29 : index
    %243 = memref.load %arg3[%c29] : memref<47xf32, #tpu.memory_space<smem>>
    %244 = vector.broadcast %243 : f32 to vector<8x256xf32>
    %245 = arith.mulf %244, %242 : vector<8x256xf32>
    %246 = arith.addf %239, %245 : vector<8x256xf32>
    %c30 = arith.constant 30 : index
    %247 = memref.load %arg3[%c30] : memref<47xf32, #tpu.memory_space<smem>>
    %248 = vector.broadcast %247 : f32 to vector<8x256xf32>
    %249 = arith.mulf %248, %208 : vector<8x256xf32>
    %250 = arith.addf %246, %249 : vector<8x256xf32>
    %c255_i32_34 = arith.constant 255 : i32
    %251 = tpu.dynamic_rotate %208 by %c255_i32_34 dim 1 : vector<8x256xf32>, i32 -> vector<8x256xf32>
    %252 = vector.broadcast %32 : vector<1x256xf32> to vector<8x256xf32>
    %253 = arith.mulf %251, %252 : vector<8x256xf32>
    %c31 = arith.constant 31 : index
    %254 = memref.load %arg3[%c31] : memref<47xf32, #tpu.memory_space<smem>>
    %255 = vector.broadcast %254 : f32 to vector<8x256xf32>
    %256 = arith.mulf %255, %253 : vector<8x256xf32>
    %257 = arith.addf %250, %256 : vector<8x256xf32>
    %c240_i32_35 = arith.constant 240 : i32
    %258 = tpu.dynamic_rotate %208 by %c240_i32_35 dim 1 : vector<8x256xf32>, i32 -> vector<8x256xf32>
    %259 = vector.broadcast %24 : vector<1x256xf32> to vector<8x256xf32>
    %260 = arith.mulf %258, %259 : vector<8x256xf32>
    %c1_i32_36 = arith.constant 1 : i32
    %261 = tpu.dynamic_rotate %260 by %c1_i32_36 dim 1 : vector<8x256xf32>, i32 -> vector<8x256xf32>
    %262 = vector.broadcast %28 : vector<1x256xf32> to vector<8x256xf32>
    %263 = arith.mulf %261, %262 : vector<8x256xf32>
    %c32 = arith.constant 32 : index
    %264 = memref.load %arg3[%c32] : memref<47xf32, #tpu.memory_space<smem>>
    %265 = vector.broadcast %264 : f32 to vector<8x256xf32>
    %266 = arith.mulf %265, %263 : vector<8x256xf32>
    %267 = arith.addf %257, %266 : vector<8x256xf32>
    %c33 = arith.constant 33 : index
    %268 = memref.load %arg3[%c33] : memref<47xf32, #tpu.memory_space<smem>>
    %269 = vector.broadcast %268 : f32 to vector<8x256xf32>
    %270 = arith.mulf %269, %260 : vector<8x256xf32>
    %271 = arith.addf %267, %270 : vector<8x256xf32>
    %c255_i32_37 = arith.constant 255 : i32
    %272 = tpu.dynamic_rotate %260 by %c255_i32_37 dim 1 : vector<8x256xf32>, i32 -> vector<8x256xf32>
    %273 = vector.broadcast %32 : vector<1x256xf32> to vector<8x256xf32>
    %274 = arith.mulf %272, %273 : vector<8x256xf32>
    %c34 = arith.constant 34 : index
    %275 = memref.load %arg3[%c34] : memref<47xf32, #tpu.memory_space<smem>>
    %276 = vector.broadcast %275 : f32 to vector<8x256xf32>
    %277 = arith.mulf %276, %274 : vector<8x256xf32>
    %278 = arith.addf %271, %277 : vector<8x256xf32>
    %c16_i32_38 = arith.constant 16 : i32
    %279 = tpu.dynamic_rotate %219 by %c16_i32_38 dim 1 : vector<8x256xf32>, i32 -> vector<8x256xf32>
    %280 = vector.broadcast %20 : vector<1x256xf32> to vector<8x256xf32>
    %281 = arith.mulf %279, %280 : vector<8x256xf32>
    %c1_i32_39 = arith.constant 1 : i32
    %282 = tpu.dynamic_rotate %281 by %c1_i32_39 dim 1 : vector<8x256xf32>, i32 -> vector<8x256xf32>
    %283 = vector.broadcast %28 : vector<1x256xf32> to vector<8x256xf32>
    %284 = arith.mulf %282, %283 : vector<8x256xf32>
    %c35 = arith.constant 35 : index
    %285 = memref.load %arg3[%c35] : memref<47xf32, #tpu.memory_space<smem>>
    %286 = vector.broadcast %285 : f32 to vector<8x256xf32>
    %287 = arith.mulf %286, %284 : vector<8x256xf32>
    %288 = arith.addf %278, %287 : vector<8x256xf32>
    %c36 = arith.constant 36 : index
    %289 = memref.load %arg3[%c36] : memref<47xf32, #tpu.memory_space<smem>>
    %290 = vector.broadcast %289 : f32 to vector<8x256xf32>
    %291 = arith.mulf %290, %281 : vector<8x256xf32>
    %292 = arith.addf %288, %291 : vector<8x256xf32>
    %c255_i32_40 = arith.constant 255 : i32
    %293 = tpu.dynamic_rotate %281 by %c255_i32_40 dim 1 : vector<8x256xf32>, i32 -> vector<8x256xf32>
    %294 = vector.broadcast %32 : vector<1x256xf32> to vector<8x256xf32>
    %295 = arith.mulf %293, %294 : vector<8x256xf32>
    %c37 = arith.constant 37 : index
    %296 = memref.load %arg3[%c37] : memref<47xf32, #tpu.memory_space<smem>>
    %297 = vector.broadcast %296 : f32 to vector<8x256xf32>
    %298 = arith.mulf %297, %295 : vector<8x256xf32>
    %299 = arith.addf %292, %298 : vector<8x256xf32>
    %c1_i32_41 = arith.constant 1 : i32
    %300 = tpu.dynamic_rotate %219 by %c1_i32_41 dim 1 : vector<8x256xf32>, i32 -> vector<8x256xf32>
    %301 = vector.broadcast %28 : vector<1x256xf32> to vector<8x256xf32>
    %302 = arith.mulf %300, %301 : vector<8x256xf32>
    %c38 = arith.constant 38 : index
    %303 = memref.load %arg3[%c38] : memref<47xf32, #tpu.memory_space<smem>>
    %304 = vector.broadcast %303 : f32 to vector<8x256xf32>
    %305 = arith.mulf %304, %302 : vector<8x256xf32>
    %306 = arith.addf %299, %305 : vector<8x256xf32>
    %c39 = arith.constant 39 : index
    %307 = memref.load %arg3[%c39] : memref<47xf32, #tpu.memory_space<smem>>
    %308 = vector.broadcast %307 : f32 to vector<8x256xf32>
    %309 = arith.mulf %308, %219 : vector<8x256xf32>
    %310 = arith.addf %306, %309 : vector<8x256xf32>
    %c255_i32_42 = arith.constant 255 : i32
    %311 = tpu.dynamic_rotate %219 by %c255_i32_42 dim 1 : vector<8x256xf32>, i32 -> vector<8x256xf32>
    %312 = vector.broadcast %32 : vector<1x256xf32> to vector<8x256xf32>
    %313 = arith.mulf %311, %312 : vector<8x256xf32>
    %c40 = arith.constant 40 : index
    %314 = memref.load %arg3[%c40] : memref<47xf32, #tpu.memory_space<smem>>
    %315 = vector.broadcast %314 : f32 to vector<8x256xf32>
    %316 = arith.mulf %315, %313 : vector<8x256xf32>
    %317 = arith.addf %310, %316 : vector<8x256xf32>
    %c240_i32_43 = arith.constant 240 : i32
    %318 = tpu.dynamic_rotate %219 by %c240_i32_43 dim 1 : vector<8x256xf32>, i32 -> vector<8x256xf32>
    %319 = vector.broadcast %24 : vector<1x256xf32> to vector<8x256xf32>
    %320 = arith.mulf %318, %319 : vector<8x256xf32>
    %c1_i32_44 = arith.constant 1 : i32
    %321 = tpu.dynamic_rotate %320 by %c1_i32_44 dim 1 : vector<8x256xf32>, i32 -> vector<8x256xf32>
    %322 = vector.broadcast %28 : vector<1x256xf32> to vector<8x256xf32>
    %323 = arith.mulf %321, %322 : vector<8x256xf32>
    %c41 = arith.constant 41 : index
    %324 = memref.load %arg3[%c41] : memref<47xf32, #tpu.memory_space<smem>>
    %325 = vector.broadcast %324 : f32 to vector<8x256xf32>
    %326 = arith.mulf %325, %323 : vector<8x256xf32>
    %327 = arith.addf %317, %326 : vector<8x256xf32>
    %c42 = arith.constant 42 : index
    %328 = memref.load %arg3[%c42] : memref<47xf32, #tpu.memory_space<smem>>
    %329 = vector.broadcast %328 : f32 to vector<8x256xf32>
    %330 = arith.mulf %329, %320 : vector<8x256xf32>
    %331 = arith.addf %327, %330 : vector<8x256xf32>
    %c255_i32_45 = arith.constant 255 : i32
    %332 = tpu.dynamic_rotate %320 by %c255_i32_45 dim 1 : vector<8x256xf32>, i32 -> vector<8x256xf32>
    %333 = vector.broadcast %32 : vector<1x256xf32> to vector<8x256xf32>
    %334 = arith.mulf %332, %333 : vector<8x256xf32>
    %c43 = arith.constant 43 : index
    %335 = memref.load %arg3[%c43] : memref<47xf32, #tpu.memory_space<smem>>
    %336 = vector.broadcast %335 : f32 to vector<8x256xf32>
    %337 = arith.mulf %336, %334 : vector<8x256xf32>
    %338 = arith.addf %331, %337 : vector<8x256xf32>
    %c46 = arith.constant 46 : index
    %339 = memref.load %arg3[%c46] : memref<47xf32, #tpu.memory_space<smem>>
    %cst_46 = arith.constant 1.000000e+00 : f32
    %340 = arith.addf %cst_46, %339 : f32
    %cst_47 = arith.constant 1.000000e+00 : f32
    %341 = arith.divf %cst_47, %340 : f32
    %c0_48 = arith.constant 0 : index
    %c0_49 = arith.constant 0 : index
    %c0_50 = arith.constant 0 : index
    %342 = vector.load %arg1[%c0_48, %c0_49, %c0_50] : memref<1x8x256xf32, #tpu.memory_space<vmem>>, vector<1x8x256xf32>
    %343 = vector.shape_cast %342 : vector<1x8x256xf32> to vector<8x256xf32>
    %c44 = arith.constant 44 : index
    %344 = memref.load %arg3[%c44] : memref<47xf32, #tpu.memory_space<smem>>
    %345 = vector.broadcast %344 : f32 to vector<8x256xf32>
    %346 = arith.mulf %345, %338 : vector<8x256xf32>
    %347 = arith.addf %343, %346 : vector<8x256xf32>
    %c0_51 = arith.constant 0 : index
    %c0_52 = arith.constant 0 : index
    %c0_53 = arith.constant 0 : index
    %348 = vector.load %arg2[%c0_51, %c0_52, %c0_53] : memref<1x8x256xf32, #tpu.memory_space<vmem>>, vector<1x8x256xf32>
    %349 = vector.shape_cast %348 : vector<1x8x256xf32> to vector<8x256xf32>
    %350 = vector.broadcast %339 : f32 to vector<8x256xf32>
    %351 = arith.mulf %350, %349 : vector<8x256xf32>
    %352 = arith.addf %347, %351 : vector<8x256xf32>
    %353 = vector.broadcast %341 : f32 to vector<8x256xf32>
    %354 = arith.mulf %352, %353 : vector<8x256xf32>
    %c0_54 = arith.constant 0 : index
    %c0_55 = arith.constant 0 : index
    %c0_56 = arith.constant 0 : index
    %355 = vector.load %arg4[%c0_54, %c0_55, %c0_56] : memref<1x8x256xf32, #tpu.memory_space<vmem>>, vector<1x8x256xf32>
    %356 = vector.shape_cast %355 : vector<1x8x256xf32> to vector<8x256xf32>
    %357 = vector.shape_cast %354 : vector<8x256xf32> to vector<1x8x256xf32>
    tpu.vector_store %arg4[%c0_54, %c0_55, %c0_56], %357 {strides = array<i32>} : memref<1x8x256xf32, #tpu.memory_space<vmem>>, vector<1x8x256xf32>,
    return
  }
  func.func @transform_0(%arg0: i32) -> (i32, i32, i32) {
    %c0_i32 = arith.constant 0 : i32
    %c0_i32_0 = arith.constant 0 : i32
    %c0_i32_1 = arith.constant 0 : i32
    return %c0_i32, %arg0, %c0_i32_0 : i32, i32, i32
  }
  func.func @transform_1(%arg0: i32) -> (i32, i32, i32) {
    %c0_i32 = arith.constant 0 : i32
    %c0_i32_0 = arith.constant 0 : i32
    %c0_i32_1 = arith.constant 0 : i32
    return %c0_i32, %arg0, %c0_i32_0 : i32, i32, i32
  }
  func.func @transform_2(%arg0: i32) -> i32 {
    %c0_i32 = arith.constant 0 : i32
    %c0_i32_0 = arith.constant 0 : i32
    return %c0_i32 : i32
  }
  func.func @transform_3(%arg0: i32) -> (i32, i32, i32) {
    %c0_i32 = arith.constant 0 : i32
    %c0_i32_0 = arith.constant 0 : i32
    %c0_i32_1 = arith.constant 0 : i32
    return %c0_i32, %arg0, %c0_i32_0 : i32, i32, i32
  }
}

</mosaic_0001>

<bundles_post_ra>
// kernel: tpu_custom_call.1
= control target key start
LH: loop header
LB: loop body
LE: loop exit
PB: predicated region body
PF: predicated region fallthrough
CT: control target
= control target key end

     0   :  { %8 = vsyncpa [#allocation3], 0  ;;  %s1345_s0 = inlined_call_operand.hbm [shape: f32[1,8,256], index: 0, kind: input, shape index: {}]   ;;  %s1346_s1 = inlined_call_operand.hbm [shape: f32[1,8,256], index: 1, kind: input, shape index: {}]   ;;  %s1347_s2 = inlined_call_operand.vmem [shape: f32[47], index: 2, kind: input, shape index: {}]   ;;  %s1348_s3 = inlined_call_operand.hbm [shape: f32[1,8,256], index: 3, kind: output, shape index: {}]  }
   0x1   :  { %9 = vsyncpa [#allocation7], 0 }
   0x2   :  { %10 = vsyncpa [#allocation5], 0 }
   0x3   :  { %11 = vsyncpa [#allocation4], 0  ;;  %s805_s12 = smov [#allocation2]   ;;  %s806_s14 = smov [#allocation6]  }
   0x4   :  { %s18_s13 = sshll.u32 %s805_s12, 4  ;;  %s28_s15 = sshll.u32 %s806_s14, 4  ;;  %s19_s13 = int_to_ptr.vmem [resolvable:$true] %s18_s13  ;;  %s29_s15 = int_to_ptr.vmem [resolvable:$true] %s28_s15 }
   0x5   :  { %s719_s18 = scalar_lea.hbm %s1345_s0, 256 }
   0x6   :  { %p720_p0 = scmp.ne.s32.totalorder %s1345_s0, %s719_s18  ;;  %p723_p1 = scmp.lt.u32.totalorder %s719_s18, %s1345_s0 }
   0x8   :  { %p725_p2 = pnand %p723_p1, %p720_p0 }
   0xa   :  { %728 = shalt.err (!%p725_p2)
}
   0xb   :  { %s729_s23 = scalar_lea.vmem %s19_s13, 256  ;;  %p734_p4 = scmp.lt.s32.totalorder %s19_s13, %s19_s13 }
   0xc   :  { %p730_p3 = scmp.ne.s32.totalorder %s19_s13, %s729_s23  ;;  %p735_p5 = scmp.lt.s32.totalorder %s729_s23, %s729_s23 }
   0xe   :  { %p736_p6 = por %p735_p5, %p734_p4 }
  0x10   :  { %p737_p7 = pnand %p736_p6, %p730_p3 }
  0x12   :  { %740 = shalt.err (!%p737_p7)
}
  0x13   :  { %21 = dma.hbm_to_vmem [thread:$0]  %s1345_s0, 256, %s19_s13, [#allocation3]  }
  0x14   :  { %s741_s28 = scalar_lea.hbm %s1346_s1, 256 }
  0x15   :  { %p742_p8 = scmp.ne.s32.totalorder %s1346_s1, %s741_s28  ;;  %p745_p9 = scmp.lt.u32.totalorder %s741_s28, %s1346_s1 }
  0x17   :  { %p747_p10 = pnand %p745_p9, %p742_p8 }
  0x19   :  { %750 = shalt.err (!%p747_p10)
}
  0x1a   :  { %s751_s6 = scalar_lea.vmem %s29_s15, 256  ;;  %p756_p12 = scmp.lt.s32.totalorder %s29_s15, %s29_s15 }
  0x1b   :  { %p752_p11 = scmp.ne.s32.totalorder %s29_s15, %s751_s6  ;;  %p757_p13 = scmp.lt.s32.totalorder %s751_s6, %s751_s6 }
  0x1d   :  { %p758_p0 = por %p757_p13, %p756_p12 }
  0x1f   :  { %p759_p1 = pnand %p758_p0, %p752_p11 }
  0x21   :  { %762 = shalt.err (!%p759_p1)
}
  0x22   :  { %31 = dma.hbm_to_vmem [thread:$0]  %s1346_s1, 256, %s29_s15, [#allocation7]  }
  0x23   :  { %s38_s10 = sshll.u32 %s1347_s2, 4  ;;  %s39_s10 = int_to_ptr.vmem [resolvable:$true] %s38_s10 }
  0x24   :  { %s763_s11 = scalar_lea.vmem %s39_s10, 16  ;;  %p768_p3 = scmp.lt.s32.totalorder %s39_s10, %s39_s10 }
  0x25   :  { %p764_p2 = scmp.ne.s32.totalorder %s39_s10, %s763_s11  ;;  %p769_p4 = scmp.lt.s32.totalorder %s763_s11, %s763_s11 }
  0x27   :  { %p770_p5 = por %p769_p4, %p768_p3 }
  0x29   :  { %p771_p6 = pnand %p770_p5, %p764_p2 }
  0x2b   :  { %774 = shalt.err (!%p771_p6)
}
  0x2c   :  { %s807_s12 = smov [#allocation8]  }
  0x2d   :  { %41 = dma.vmem_to_smem %s39_s10, 16, %s807_s12, [#allocation5]  }
  0x2e   :  { %797 = dma.done.wait [#allocation3], 256  }
  0x2f   :  { %798 = vsyncadd [#allocation3], 4294967040 }
  0x30   :  { %799 = dma.done.wait [#allocation7], 256  }
  0x31   :  { %800 = vsyncadd [#allocation7], 4294967040 }
  0x32   :  { %801 = dma.done.wait [#allocation5], 16  }
  0x33   :  { %802 = vsyncadd [#allocation5], 4294967280 }
  0x34   :  { %51 = sfence }
  0x35   :  { %v103_v0 = vld [vmem:[#allocation2] sm:$0xff]  ;;  %v104_v1 = vld [vmem:[#allocation2 + $0x8] sm:$0xff]  ;;  %s120_s1 = sld [smem:[#allocation8]]  ;;  %s654_s2 = sld [smem:[#allocation8 + $0x1]]  ;;  %v52_v24 = vlaneseq  ;;  %v812_v30 = vmov 0.0  }
  0x36   :  { %v105_v2 = vadd.f32 %v104_v1, %v103_v0  ;;  %v108_v3 = vmul.f32 %v103_v0, %v103_v0  ;;  %v109_v4 = vmul.f32 %v104_v1, %v104_v1  ;;  %s808_s13 = smov 112   ;;  %s809_s14 = smov 16  }
  0x37   :  { %s810_s15 = smov 1   ;;  %s811_s16 = smov 127   ;;  %v879_v25 = vand.u32 127, %v52_v24 }
  0x38   :  { %106 = vadd.xlane.f32.xlu0 %v105_v2  ;;  %v110_v5 = vadd.f32 %v109_v4, %v108_v3  ;;  %s927_s17 = sld [smem:[#allocation8 + $0x6]]  ;;  %s929_s18 = sld [smem:[#allocation8 + $0xf]] }
  0x39   :  { %v54_v27 = vadd.s32 128, %v879_v25  ;;  %vm135_vm0 = vcmp.lt.s32.totalorder %v879_v25, 16  ;;  %vm79_vm2 = vcmp.ge.s32.totalorder %v879_v25, 16  ;;  %vm246_vm3 = vcmp.lt.s32.totalorder %v879_v25, 112  ;;  %s931_s19 = sld [smem:[#allocation8 + $0x3]]  ;;  %s933_s20 = sld [smem:[#allocation8 + $0xc]] }
  0x3a   :  { %v895_v34 = vsel %vm79_vm2, 1.0, %v812_v30  ;;  %s935_s21 = sld [smem:[#allocation8 + $0x9]]  ;;  %s937_s22 = sld [smem:[#allocation8 + $0x12]]  ;;  %v59_v42 = vand.u32 15, %v879_v25  ;;  %vm144_vm7 = vcmp.lt.s32.totalorder %v879_v25, 1  ;;  %vm173_vm8 = vcmp.lt.s32.totalorder %v879_v25, 127 }
  0x3b   :  { %v121_v14 = vstv %s120_s1  ;;  %v125_v17 = vstv %s654_s2  ;;  %vm86_vm1 = vcmp.lt.s32.totalorder %v54_v27, 240  ;;  %v66_v41 = vand.u32 15, %v54_v27  ;;  %s939_s23 = sld [smem:[#allocation8 + $0x5]]  ;;  %s941_s24 = sld [smem:[#allocation8 + $0xe]] }
  0x3c   :  { %111 = vadd.xlane.f32.xlu0 %v110_v5  ;;  %v892_v31 = vsel %vm86_vm1, 1.0, %v812_v30  ;;  %s944_s25 = sld [smem:[#allocation8 + $0x2]]  ;;  %s946_s26 = sld [smem:[#allocation8 + $0xb]]  ;;  %vm91_vm6 = vcmp.ge.s32.totalorder %v59_v42, 1  ;;  %vm969_vm9 = vcmp.le.s32.totalorder %v59_v42, 14 }
  0x3d   :  { %vm92_vm4 = vcmp.ge.s32.totalorder %v66_v41, 1  ;;  %vm98_vm5 = vcmp.le.s32.totalorder %v66_v41, 14  ;;  %s948_s27 = sld [smem:[#allocation8 + $0x4]]  ;;  %s950_s28 = sld [smem:[#allocation8 + $0xd]]  ;;  %v967_v53 = vsel %vm91_vm6, 1.0, %v812_v30  ;;  %v1004_v5 = vsel %vm969_vm9, 1.0, %v812_v30 }
  0x3e   :  { %v211_v44 = vstv %s927_s17  ;;  %v217_v48 = vstv %s929_s18  ;;  %v960_v50 = vsel %vm92_vm4, 1.0, %v812_v30  ;;  %v963_v51 = vsel %vm98_vm5, 1.0, %v812_v30  ;;  %s976_s29 = sld [smem:[#allocation8 + $0x7]]  ;;  %s978_s30 = sld [smem:[#allocation8 + $0x10]] }
  0x3f   :  { %v158_v45 = vstv %s931_s19  ;;  %v164_v46 = vstv %s933_s20  ;;  %s1014_s4 = sld [smem:[#allocation8 + $0x8]]  ;;  %s1016_s5 = sld [smem:[#allocation8 + $0x11]] }
  0x40   :  { %v272_v49 = vstv %s935_s21  ;;  %v278_v52 = vstv %s937_s22  ;;  %s1038_s6 = sld [smem:[#allocation8 + $0xa]]  ;;  %s1040_s0 = sld [smem:[#allocation8 + $0x13]] }
  0x41   :  { %v199_v57 = vstv %s939_s23  ;;  %v205_v58 = vstv %s941_s24  ;;  %s1054_s7 = sld [smem:[#allocation8 + $0x2d]]  ;;  %s1064_s9 = sld [smem:[#allocation8 + $0x14]] }
  0x42   :  { %v150_v63 = vstv %s944_s25  ;;  %v154_v2 = vstv %s946_s26  ;;  %s1062_s8 = sld [smem:[#allocation8 + $0x15]]  ;;  %s676_s11 = sld [smem:[#allocation8 + $0x16]] }
  0x43   :  { %s678_s12 = sld [smem:[#allocation8 + $0x17]]  ;;  %s677_s1 = sld [smem:[#allocation8 + $0x18]] }
  0x44   :  { %v237_v27 = vstv %s978_s30  ;;  %s679_s2 = sld [smem:[#allocation8 + $0x19]]  ;;  %s1118_s17 = sld [smem:[#allocation8 + $0x2e]] }
  0x45   :  { %s681_s18 = sld [smem:[#allocation8 + $0x1b]]  ;;  %s1197_s19 = sld [smem:[#allocation8 + $0x1e]] }
  0x46   :  { %s1199_s20 = sld [smem:[#allocation8 + $0x1d]]  ;;  %s1201_s21 = sld [smem:[#allocation8 + $0x1c]] }
  0x47   :  { %s312_s10 = ssub.f32 0.0, %s1054_s7  ;;  %s1226_s22 = sld [smem:[#allocation8 + $0x20]] }
  0x48   :  { %s1245_s23 = sld [smem:[#allocation8 + $0x22]]  ;;  %s1247_s24 = sld [smem:[#allocation8 + $0x24]] }
  0x49   :  { %s1253_s25 = sld [smem:[#allocation8 + $0x23]]  ;;  %s1261_s26 = sld [smem:[#allocation8 + $0x25]] }
  0x4a   :  { %s1285_s30 = sld [smem:[#allocation8 + $0x29]] }
  0xc5   :  { %v107_v6 = vpop.xlane.xlu0 %106 }
  0xc6   :  { %v113_v7 = vmul.f32 0.00390625, %v107_v6 }
  0xc8   :  { %v115_v9 = vmul.f32 %v113_v7, %v113_v7 }
  0xc9   :  { %v112_v8 = vpop.xlane.xlu0 %111 }
  0xca   :  { %v114_v10 = vmul.f32 0.00390625, %v112_v8 }
  0xcc   :  { %v116_v11 = vsub.f32 %v114_v10, %v115_v9 }
  0xce   :  { %v117_v12 = vmax.f32 %v116_v11, 0.0 }
  0xd0   :  { %v118_v13 = vadd.f32 1e-05, %v117_v12  ;;  %v179_v12 = vstv %s948_s27  ;;  %s1266_s27 = sld [smem:[#allocation8 + $0x26]] }
  0xd2   :  { %711 = vrsqrt.f32 %v118_v13  ;;  %v185_v13 = vstv %s950_s28  ;;  %s1269_s28 = sld [smem:[#allocation8 + $0x27]] }
  0xdc   :  { %v712_v15 = vpop.eup %711 }
  0xdd   :  { %v122_v16 = vmul.f32 %v712_v15, %v121_v14 }
  0xdf   :  { %v124_v18 = vmul.f32 %v122_v16, %v113_v7  ;;  %v127_v20 = vmul.f32 %v122_v16, %v103_v0  ;;  %v128_v22 = vmul.f32 %v122_v16, %v104_v1 }
  0xe1   :  { %v126_v19 = vsub.f32 %v125_v17, %v124_v18 }
  0xe3   :  { %v861_v21 = vadd.f32 %v127_v20, %v126_v19  ;;  %v867_v23 = vadd.f32 %v128_v22, %v126_v19 }
  0xe5   :  { %242 = vrot.lane.b32.xlu0 %v861_v21, %s808_s13  ;;  %131 = vrot.lane.b32.xlu1 %v861_v21, %s809_s14  ;;  %v974_v55 = vmul.f32 %v211_v44, %v861_v21  ;;  %v983_v59 = vmul.f32 %v211_v44, %v867_v23  ;;  %v986_v60 = vmul.f32 %v217_v48, %v861_v21 }
  0xe6   :  { %v994_v1 = vmul.f32 %v217_v48, %v867_v23 }
  0xe9   :  { %192 = vrot.lane.b32.xlu0 %v867_v23, %s810_s15  ;;  %133 = vrot.lane.b32.xlu1 %v867_v23, %s809_s14 }
  0xed   :  { %224 = vrot.lane.b32.xlu0 %v867_v23, %s811_s16  ;;  %244 = vrot.lane.b32.xlu1 %v867_v23, %s808_s13 }
  0xf1   :  { %190 = vrot.lane.b32.xlu1 %v861_v21, %s810_s15 }
 0x157   :  { %v132_v26 = vpop.permute.xlu1 %131  ;;  %v243_v32 = vpop.permute.xlu0 %242 }
 0x15b   :  { %v134_v28 = vpop.permute.xlu1 %133  ;;  %v193_v56 = vpop.permute.xlu0 %192 }
 0x15c   :  { %v885_v29 = vsel %vm135_vm0, %v132_v26, %v134_v28  ;;  %v137_v35 = vsel %vm135_vm0, %v134_v28, %v132_v26  ;;  %v231_v26 = vstv %s976_s29  ;;  %s1283_s29 = sld [smem:[#allocation8 + $0x28]] }
 0x15d   :  { %142 = vrot.lane.b32.xlu1 %v885_v29, %s810_s15  ;;  %v907_v38 = vmul.f32 %v895_v34, %v137_v35  ;;  %v160_v6 = vmul.f32 %v158_v45, %v885_v29  ;;  %v166_v7 = vmul.f32 %v164_v46, %v885_v29 }
 0x15f   :  { %v245_v33 = vpop.permute.xlu1 %244  ;;  %v159_v19 = vmul.f32 %v158_v45, %v907_v38  ;;  %v165_v20 = vmul.f32 %v164_v46, %v907_v38  ;;  %v225_v28 = vpop.permute.xlu0 %224 }
 0x160   :  { %v248_v36 = vsel %vm246_vm3, %v245_v33, %v243_v32  ;;  %v921_v39 = vsel %vm246_vm3, %v243_v32, %v245_v33 }
 0x161   :  { %v902_v37 = vmul.f32 %v892_v31, %v248_v36  ;;  %171 = vrot.lane.b32.xlu1 %v885_v29, %s811_s16  ;;  %v1027_v23 = vmul.f32 %v272_v49, %v921_v39  ;;  %v1032_v24 = vmul.f32 %v278_v52, %v921_v39 }
 0x163   :  { %253 = vrot.lane.b32.xlu0 %v902_v37, %s810_s15  ;;  %v191_v40 = vpop.permute.xlu1 %190 }
 0x164   :  { %v194_v61 = vsel %vm144_vm7, %v191_v40, %v193_v56  ;;  %v195_v62 = vsel %vm144_vm7, %v193_v56, %v191_v40 }
 0x165   :  { %140 = vrot.lane.b32.xlu1 %v907_v38, %s810_s15  ;;  %v196_v10 = vmul.f32 %v967_v53, %v195_v62  ;;  %v197_v11 = vmul.f32 %v960_v50, %v194_v61 }
 0x167   :  { %285 = vrot.lane.b32.xlu0 %v902_v37, %s811_s16  ;;  %v200_v29 = vmul.f32 %v199_v57, %v196_v10  ;;  %v201_v30 = vmul.f32 %v199_v57, %v197_v11  ;;  %v206_v45 = vmul.f32 %v205_v58, %v196_v10  ;;  %v207_v46 = vmul.f32 %v205_v58, %v197_v11 }
 0x169   :  { %169 = vrot.lane.b32.xlu1 %v907_v38, %s811_s16 }
 0x16d   :  { %222 = vrot.lane.b32.xlu1 %v861_v21, %s811_s16 }
 0x171   :  { %251 = vrot.lane.b32.xlu1 %v921_v39, %s810_s15 }
 0x175   :  { %283 = vrot.lane.b32.xlu1 %v921_v39, %s811_s16 }
 0x1cf   :  { %v143_v43 = vpop.permute.xlu1 %142 }
 0x1d3   :  { %v172_v47 = vpop.permute.xlu1 %171 }
 0x1d5   :  { %v254_v54 = vpop.permute.xlu0 %253 }
 0x1d7   :  { %v141_v0 = vpop.permute.xlu1 %140 }
 0x1d8   :  { %v145_v3 = vsel %vm144_vm7, %v141_v0, %v143_v43  ;;  %v146_v4 = vsel %vm144_vm7, %v143_v43, %v141_v0 }
 0x1d9   :  { %v147_v8 = vmul.f32 %v967_v53, %v146_v4  ;;  %v148_v9 = vmul.f32 %v960_v50, %v145_v3  ;;  %v266_v3 = vstv %s1016_s5  ;;  %s1301_s5 = sld [smem:[#allocation8 + $0x2b]] }
 0x1db   :  { %v151_v14 = vmul.f32 %v150_v63, %v147_v8  ;;  %v152_v15 = vmul.f32 %v150_v63, %v148_v9  ;;  %v155_v16 = vmul.f32 %v154_v2, %v147_v8  ;;  %v156_v17 = vmul.f32 %v154_v2, %v148_v9  ;;  %v170_v18 = vpop.permute.xlu1 %169 }
 0x1dc   :  { %v174_v21 = vsel %vm173_vm8, %v170_v18, %v172_v47  ;;  %v175_v22 = vsel %vm173_vm8, %v172_v47, %v170_v18  ;;  %v260_v2 = vstv %s1014_s4  ;;  %s1298_s4 = sld [smem:[#allocation8 + $0x2a]] }
 0x1dd   :  { %v176_v32 = vmul.f32 %v1004_v5, %v174_v21  ;;  %v177_v33 = vmul.f32 %v963_v51, %v175_v22  ;;  %v161_v35 = vadd.f32 %v159_v19, %v151_v14  ;;  %v162_v36 = vadd.f32 %v160_v6, %v152_v15 }
 0x1de   :  { %v167_v38 = vadd.f32 %v165_v20, %v155_v16  ;;  %v168_v40 = vadd.f32 %v166_v7, %v156_v17  ;;  %v292_v19 = vstv %s1038_s6  ;;  %v298_v20 = vstv %s1040_s0  ;;  %s1319_s6 = sld [smem:[#allocation8 + $0x2c]] }
 0x1df   :  { %v223_v41 = vpop.permute.xlu1 %222  ;;  %v180_v39 = vmul.f32 %v179_v12, %v176_v32  ;;  %v181_v42 = vmul.f32 %v179_v12, %v177_v33  ;;  %v186_v43 = vmul.f32 %v185_v13, %v176_v32  ;;  %v187_v44 = vmul.f32 %v185_v13, %v177_v33 }
 0x1e0   :  { %v226_v47 = vsel %vm173_vm8, %v223_v41, %v225_v28  ;;  %v227_v48 = vsel %vm173_vm8, %v225_v28, %v223_v41  ;;  %v280_v32 = vmul.f32 %v278_v52, %v902_v37 }
 0x1e1   :  { %v182_v56 = vadd.f32 %v180_v39, %v161_v35  ;;  %v183_v57 = vadd.f32 %v181_v42, %v162_v36  ;;  %v188_v61 = vadd.f32 %v186_v43, %v167_v38  ;;  %v189_v62 = vadd.f32 %v187_v44, %v168_v40 }
 0x1e2   :  { %v228_v63 = vmul.f32 %v1004_v5, %v226_v47  ;;  %v229_v0 = vmul.f32 %v963_v51, %v227_v48 }
 0x1e3   :  { %v252_v4 = vpop.permute.xlu1 %251  ;;  %v202_v58 = vadd.f32 %v200_v29, %v182_v56  ;;  %v203_v6 = vadd.f32 %v201_v30, %v183_v57  ;;  %v208_v7 = vadd.f32 %v206_v45, %v188_v61  ;;  %v209_v8 = vadd.f32 %v207_v46, %v189_v62 }
 0x1e4   :  { %v232_v9 = vmul.f32 %v231_v26, %v228_v63  ;;  %v233_v10 = vmul.f32 %v231_v26, %v229_v0  ;;  %v238_v11 = vmul.f32 %v237_v27, %v228_v63  ;;  %v239_v12 = vmul.f32 %v237_v27, %v229_v0 }
 0x1e5   :  { %v214_v13 = vadd.f32 %v974_v55, %v202_v58  ;;  %v215_v14 = vadd.f32 %v983_v59, %v203_v6  ;;  %v220_v15 = vadd.f32 %v986_v60, %v208_v7  ;;  %v221_v16 = vadd.f32 %v994_v1, %v209_v8  ;;  %v286_v55 = vpop.permute.xlu0 %285 }
 0x1e6   :  { %v255_v17 = vsel %vm144_vm7, %v252_v4, %v254_v54  ;;  %v256_v18 = vsel %vm144_vm7, %v254_v54, %v252_v4  ;;  %v274_v30 = vmul.f32 %v272_v49, %v902_v37  ;;  %v308_v56 = vstv %s1062_s8 }
 0x1e7   :  { %v284_v21 = vpop.permute.xlu1 %283  ;;  %v234_v22 = vadd.f32 %v232_v9, %v214_v13  ;;  %v235_v59 = vadd.f32 %v233_v10, %v215_v14  ;;  %v240_v26 = vadd.f32 %v238_v11, %v220_v15  ;;  %v241_v60 = vadd.f32 %v239_v12, %v221_v16 }
 0x1e8   :  { %v257_v1 = vmul.f32 %v967_v53, %v256_v18  ;;  %v258_v27 = vmul.f32 %v960_v50, %v255_v17  ;;  %v287_v28 = vsel %vm173_vm8, %v284_v21, %v286_v55  ;;  %v288_v29 = vsel %vm173_vm8, %v286_v55, %v284_v21 }
 0x1e9   :  { %v289_v33 = vmul.f32 %v1004_v5, %v287_v28  ;;  %v290_v35 = vmul.f32 %v963_v51, %v288_v29  ;;  %v304_v57 = vstv %s1064_s9  ;;  %v316_v7 = vstv %s1054_s7  ;;  %s813_s7 = smov [#allocation9]  }
 0x1ea   :  { %v261_v36 = vmul.f32 %v260_v2, %v257_v1  ;;  %v262_v38 = vmul.f32 %v260_v2, %v258_v27  ;;  %v267_v40 = vmul.f32 %v266_v3, %v257_v1  ;;  %v268_v41 = vmul.f32 %v266_v3, %v258_v27  ;;  %s637_s8 = sshll.u32 %s813_s7, 4  ;;  %s638_s8 = int_to_ptr.vmem [resolvable:$true] %s637_s8 }
 0x1eb   :  { %v293_v39 = vmul.f32 %v292_v19, %v289_v33  ;;  %v294_v42 = vmul.f32 %v292_v19, %v290_v35  ;;  %v299_v43 = vmul.f32 %v298_v20, %v289_v33  ;;  %v300_v44 = vmul.f32 %v298_v20, %v290_v35  ;;  %s775_s9 = scalar_lea.vmem %s638_s8, 256  ;;  %p780_p8 = scmp.lt.s32.totalorder %s638_s8, %s638_s8 }
 0x1ec   :  { %v263_v45 = vadd.f32 %v261_v36, %v234_v22  ;;  %v264_v49 = vadd.f32 %v262_v38, %v235_v59  ;;  %v269_v46 = vadd.f32 %v267_v40, %v240_v26  ;;  %v270_v47 = vadd.f32 %v268_v41, %v241_v60  ;;  %p776_p7 = scmp.ne.s32.totalorder %s638_s8, %s775_s9  ;;  %p781_p9 = scmp.lt.s32.totalorder %s775_s9, %s775_s9 }
 0x1ed   :  { %v313_v2 = vstv %s312_s10  ;;  %v353_v41 = vstv %s676_s11 }
 0x1ee   :  { %v275_v37 = vadd.f32 %v1027_v23, %v263_v45  ;;  %v276_v52 = vadd.f32 %v274_v30, %v264_v49  ;;  %v281_v48 = vadd.f32 %v1032_v24, %v269_v46  ;;  %v282_v54 = vadd.f32 %v280_v32, %v270_v47  ;;  %p782_p10 = por %p781_p9, %p780_p8 }
 0x1f0   :  { %v295_v61 = vadd.f32 %v293_v39, %v275_v37  ;;  %v296_v62 = vadd.f32 %v294_v42, %v276_v52  ;;  %v301_v63 = vadd.f32 %v299_v43, %v281_v48  ;;  %v302_v0 = vadd.f32 %v300_v44, %v282_v54  ;;  %p783_p11 = pnand %p782_p10, %p776_p7 }
 0x1f1   :  { %v364_v42 = vstv %s678_s12  ;;  %v357_v44 = vstv %s677_s1 }
 0x1f2   :  { %v309_v3 = vadd.f32 %v308_v56, %v301_v63  ;;  %v310_v4 = vadd.f32 %v308_v56, %v302_v0  ;;  %v305_v58 = vadd.f32 %v304_v57, %v295_v61  ;;  %v306_v6 = vadd.f32 %v304_v57, %v296_v62 }
 0x1f3   :  { %v368_v56 = vstv %s679_s2 }
 0x1f4   :  { %v321_v8 = vmax.f32 %v313_v2, %v309_v3  ;;  %v322_v9 = vmax.f32 %v313_v2, %v310_v4  ;;  %v314_v10 = vmax.f32 %v313_v2, %v305_v58  ;;  %v315_v23 = vmax.f32 %v313_v2, %v306_v6 }
 0x1f6   :  { %v323_v11 = vmin.f32 %v316_v7, %v321_v8  ;;  %v324_v12 = vmin.f32 %v316_v7, %v322_v9  ;;  %v317_v24 = vmin.f32 %v316_v7, %v314_v10  ;;  %v318_v13 = vmin.f32 %v316_v7, %v315_v23 }
 0x1f8   :  { %v325_v14 = vsub.f32 %v309_v3, %v323_v11  ;;  %v326_v15 = vsub.f32 %v310_v4, %v324_v12  ;;  %v319_v16 = vsub.f32 %v305_v58, %v317_v24  ;;  %v320_v17 = vsub.f32 %v306_v6, %v318_v13 }
 0x1fa   :  { %v335_v18 = vadd.f32 %v326_v15, %v325_v14  ;;  %v327_v19 = vadd.f32 %v320_v17, %v319_v16  ;;  %v330_v20 = vmul.f32 %v319_v16, %v319_v16  ;;  %v331_v21 = vmul.f32 %v320_v17, %v320_v17 }
 0x1fb   :  { %v338_v55 = vmul.f32 %v325_v14, %v325_v14  ;;  %v339_v22 = vmul.f32 %v326_v15, %v326_v15 }
 0x1fc   :  { %336 = vadd.xlane.f32.xlu0 %v335_v18  ;;  %328 = vadd.xlane.f32.xlu1 %v327_v19  ;;  %v332_v59 = vadd.f32 %v331_v21, %v330_v20 }
 0x1fd   :  { %v340_v26 = vadd.f32 %v339_v22, %v338_v55 }
 0x200   :  { %333 = vadd.xlane.f32.xlu0 %v332_v59  ;;  %341 = vadd.xlane.f32.xlu1 %v340_v26 }
 0x289   :  { %v337_v60 = vpop.xlane.xlu0 %336  ;;  %v329_v1 = vpop.xlane.xlu1 %328 }
 0x28a   :  { %v343_v27 = vadd.f32 %v337_v60, %v329_v1 }
 0x28c   :  { %v345_v28 = vmul.f32 0.001953125, %v343_v27 }
 0x28d   :  { %v334_v29 = vpop.xlane.xlu0 %333  ;;  %v342_v30 = vpop.xlane.xlu1 %341 }
 0x28e   :  { %v344_v32 = vadd.f32 %v342_v30, %v334_v29  ;;  %v347_v33 = vmul.f32 %v345_v28, %v345_v28 }
 0x290   :  { %v346_v35 = vmul.f32 0.001953125, %v344_v32 }
 0x292   :  { %v348_v36 = vsub.f32 %v346_v35, %v347_v33  ;;  %v395_v35 = vstv %s681_s18 }
 0x294   :  { %v349_v38 = vmax.f32 %v348_v36, 0.0  ;;  %v429_v36 = vstv %s1197_s19 }
 0x296   :  { %v350_v40 = vadd.f32 1e-05, %v349_v38  ;;  %v423_v38 = vstv %s1199_s20 }
 0x298   :  { %713 = vrsqrt.f32 %v350_v40 }
 0x2a2   :  { %v714_v39 = vpop.eup %713 }
 0x2a3   :  { %v354_v43 = vmul.f32 %v714_v39, %v353_v41  ;;  %v365_v45 = vmul.f32 %v714_v39, %v364_v42  ;;  %v409_v39 = vstv %s1201_s21 }
 0x2a5   :  { %v356_v49 = vmul.f32 %v354_v43, %v345_v28  ;;  %v360_v47 = vmul.f32 %v354_v43, %v320_v17  ;;  %v359_v37 = vmul.f32 %v354_v43, %v319_v16  ;;  %v367_v54 = vmul.f32 %v365_v45, %v345_v28 }
 0x2a6   :  { %v370_v61 = vmul.f32 %v365_v45, %v325_v14  ;;  %v371_v62 = vmul.f32 %v365_v45, %v326_v15 }
 0x2a7   :  { %v358_v46 = vsub.f32 %v357_v44, %v356_v49  ;;  %v369_v57 = vsub.f32 %v368_v56, %v367_v54 }
 0x2a9   :  { %v1086_v52 = vadd.f32 %v360_v47, %v358_v46  ;;  %v1088_v48 = vadd.f32 %v359_v37, %v358_v46  ;;  %v1098_v63 = vadd.f32 %v370_v61, %v369_v57  ;;  %v1100_v0 = vadd.f32 %v371_v62, %v369_v57 }
 0x2ab   :  { %376 = vrot.lane.b32.xlu1 %v1086_v52, %s809_s14  ;;  %374 = vrot.lane.b32.xlu0 %v1088_v48, %s809_s14 }
 0x2af   :  { %448 = vrot.lane.b32.xlu1 %v1088_v48, %s808_s13  ;;  %450 = vrot.lane.b32.xlu0 %v1086_v52, %s808_s13 }
 0x2b3   :  { %490 = vrot.lane.b32.xlu1 %v1098_v63, %s809_s14  ;;  %492 = vrot.lane.b32.xlu0 %v1100_v0, %s809_s14  ;;  %s609_s14 = sadd.f32 1.0, %s1118_s17 }
 0x2b5   :  { %v610_v2 = vstv %s609_s14 }
 0x2b6   :  { %715 = vrcp.f32 %v610_v2 }
 0x2b7   :  { %566 = vrot.lane.b32.xlu1 %v1098_v63, %s808_s13  ;;  %568 = vrot.lane.b32.xlu0 %v1100_v0, %s808_s13  ;;  %s680_s13 = sld [smem:[#allocation8 + $0x1a]] }
 0x2bb   :  { %414 = vrot.lane.b32.xlu1 %v1088_v48, %s810_s15  ;;  %416 = vrot.lane.b32.xlu0 %v1086_v52, %s810_s15 }
 0x2bd   :  { %v391_v60 = vstv %s680_s13 }
 0x2bf   :  { %434 = vrot.lane.b32.xlu1 %v1088_v48, %s811_s16  ;;  %436 = vrot.lane.b32.xlu0 %v1086_v52, %s811_s16 }
 0x2c0   :  { %v716_v3 = vpop.eup %715 }
 0x2c1   :  { %700 = vpush %v716_v3 }
 0x2f2   :  { %s701_s0 = spop %700 }
 0x31d   :  { %v377_v4 = vpop.permute.xlu1 %376  ;;  %v375_v58 = vpop.permute.xlu0 %374 }
 0x31e   :  { %v379_v6 = vsel %vm135_vm0, %v377_v4, %v375_v58  ;;  %v1125_v7 = vsel %vm135_vm0, %v375_v58, %v377_v4 }
 0x31f   :  { %v1128_v8 = vmul.f32 %v895_v34, %v379_v6  ;;  %384 = vrot.lane.b32.xlu0 %v1125_v7, %s810_s15  ;;  %v397_v47 = vmul.f32 %v395_v35, %v1125_v7 }
 0x321   :  { %v449_v9 = vpop.permute.xlu1 %448  ;;  %382 = vrot.lane.b32.xlu1 %v1128_v8, %s810_s15  ;;  %v451_v10 = vpop.permute.xlu0 %450  ;;  %v396_v46 = vmul.f32 %v395_v35, %v1128_v8 }
 0x322   :  { %v453_v12 = vsel %vm246_vm3, %v451_v10, %v449_v9  ;;  %v1148_v13 = vsel %vm246_vm3, %v449_v9, %v451_v10 }
 0x323   :  { %402 = vrot.lane.b32.xlu0 %v1125_v7, %s811_s16  ;;  %v1151_v14 = vmul.f32 %v892_v31, %v453_v12  ;;  %v431_v7 = vmul.f32 %v429_v36, %v1086_v52 }
 0x325   :  { %v491_v23 = vpop.permute.xlu1 %490  ;;  %400 = vrot.lane.b32.xlu1 %v1128_v8, %s811_s16  ;;  %v493_v11 = vpop.permute.xlu0 %492 }
 0x326   :  { %v1142_v24 = vsel %vm135_vm0, %v491_v23, %v493_v11  ;;  %v495_v15 = vsel %vm135_vm0, %v493_v11, %v491_v23 }
 0x327   :  { %500 = vrot.lane.b32.xlu0 %v1142_v24, %s810_s15  ;;  %v1166_v16 = vmul.f32 %v895_v34, %v495_v15 }
 0x329   :  { %456 = vrot.lane.b32.xlu1 %v1148_v13, %s810_s15  ;;  %v567_v17 = vpop.permute.xlu1 %566  ;;  %v569_v18 = vpop.permute.xlu0 %568 }
 0x32a   :  { %v571_v19 = vsel %vm246_vm3, %v569_v18, %v567_v17  ;;  %v1189_v20 = vsel %vm246_vm3, %v567_v17, %v569_v18  ;;  %v430_v17 = vmul.f32 %v429_v36, %v1088_v48 }
 0x32b   :  { %458 = vrot.lane.b32.xlu0 %v1151_v14, %s810_s15  ;;  %v1181_v34 = vmul.f32 %v892_v31, %v571_v19 }
 0x32d   :  { %476 = vrot.lane.b32.xlu1 %v1148_v13, %s811_s16  ;;  %v417_v31 = vpop.permute.xlu0 %416  ;;  %v415_v21 = vpop.permute.xlu1 %414 }
 0x32e   :  { %v418_v28 = vsel %vm144_vm7, %v415_v21, %v417_v31  ;;  %v419_v29 = vsel %vm144_vm7, %v417_v31, %v415_v21 }
 0x32f   :  { %478 = vrot.lane.b32.xlu0 %v1151_v14, %s811_s16  ;;  %v420_v43 = vmul.f32 %v967_v53, %v419_v29  ;;  %v421_v44 = vmul.f32 %v960_v50, %v418_v28 }
 0x331   :  { %532 = vrot.lane.b32.xlu1 %v1098_v63, %s810_s15  ;;  %v437_v55 = vpop.permute.xlu0 %436  ;;  %v435_v22 = vpop.permute.xlu1 %434  ;;  %v424_v6 = vmul.f32 %v423_v38, %v420_v43  ;;  %v425_v8 = vmul.f32 %v423_v38, %v421_v44 }
 0x332   :  { %v438_v57 = vsel %vm173_vm8, %v435_v22, %v437_v55  ;;  %v439_v61 = vsel %vm173_vm8, %v437_v55, %v435_v22 }
 0x333   :  { %520 = vrot.lane.b32.xlu0 %v1142_v24, %s811_s16  ;;  %v440_v9 = vmul.f32 %v1004_v5, %v438_v57  ;;  %v441_v10 = vmul.f32 %v963_v51, %v439_v61 }
 0x335   :  { %498 = vrot.lane.b32.xlu1 %v1166_v16, %s810_s15 }
 0x337   :  { %534 = vrot.lane.b32.xlu0 %v1100_v0, %s810_s15 }
 0x339   :  { %518 = vrot.lane.b32.xlu1 %v1166_v16, %s811_s16 }
 0x33b   :  { %554 = vrot.lane.b32.xlu0 %v1100_v0, %s811_s16 }
 0x33d   :  { %552 = vrot.lane.b32.xlu1 %v1098_v63, %s811_s16 }
 0x33f   :  { %576 = vrot.lane.b32.xlu0 %v1181_v34, %s810_s15 }
 0x341   :  { %574 = vrot.lane.b32.xlu1 %v1189_v20, %s810_s15  ;;  %s1213_s15 = sld [smem:[#allocation8 + $0x1f]] }
 0x343   :  { %596 = vrot.lane.b32.xlu0 %v1181_v34, %s811_s16 }
 0x345   :  { %594 = vrot.lane.b32.xlu1 %v1189_v20, %s811_s16  ;;  %s1218_s16 = sld [smem:[#allocation8 + $0x21]] }
 0x347   :  { %v443_v15 = vstv %s1213_s15 }
 0x348   :  { %v444_v48 = vmul.f32 %v443_v15, %v440_v9 }
 0x391   :  { %v385_v59 = vpop.permute.xlu0 %384 }
 0x393   :  { %v383_v26 = vpop.permute.xlu1 %382 }
 0x394   :  { %v386_v1 = vsel %vm144_vm7, %v383_v26, %v385_v59  ;;  %v387_v27 = vsel %vm144_vm7, %v385_v59, %v383_v26  ;;  %v471_v59 = vstv %s1218_s16  ;;  %v465_v26 = vstv %s1226_s22 }
 0x395   :  { %v388_v30 = vmul.f32 %v967_v53, %v387_v27  ;;  %v389_v32 = vmul.f32 %v960_v50, %v386_v1  ;;  %v403_v33 = vpop.permute.xlu0 %402 }
 0x397   :  { %v392_v40 = vmul.f32 %v391_v60, %v388_v30  ;;  %v393_v41 = vmul.f32 %v391_v60, %v389_v32  ;;  %v401_v42 = vpop.permute.xlu1 %400  ;;  %v445_v60 = vmul.f32 %v443_v15, %v441_v10 }
 0x398   :  { %v404_v45 = vsel %vm173_vm8, %v401_v42, %v403_v33  ;;  %v405_v49 = vsel %vm173_vm8, %v403_v33, %v401_v42 }
 0x399   :  { %v406_v37 = vmul.f32 %v1004_v5, %v404_v45  ;;  %v407_v54 = vmul.f32 %v963_v51, %v405_v49  ;;  %v501_v56 = vpop.permute.xlu0 %500  ;;  %v398_v62 = vadd.f32 %v396_v46, %v392_v40  ;;  %v399_v2 = vadd.f32 %v397_v47, %v393_v41 }
 0x39a   :  { %v473_v40 = vmul.f32 %v471_v59, %v1151_v14  ;;  %v472_v41 = vmul.f32 %v471_v59, %v1148_v13  ;;  %v485_v49 = vstv %s1245_s23  ;;  %v513_v46 = vstv %s1247_s24 }
 0x39b   :  { %v410_v3 = vmul.f32 %v409_v39, %v406_v37  ;;  %v411_v4 = vmul.f32 %v409_v39, %v407_v54  ;;  %v457_v58 = vpop.permute.xlu1 %456  ;;  %v507_v14 = vstv %s1253_s25 }
 0x39d   :  { %v412_v23 = vadd.f32 %v410_v3, %v398_v62  ;;  %v413_v11 = vadd.f32 %v411_v4, %v399_v2  ;;  %v459_v12 = vpop.permute.xlu0 %458 }
 0x39e   :  { %v460_v18 = vsel %vm144_vm7, %v457_v58, %v459_v12  ;;  %v461_v19 = vsel %vm144_vm7, %v459_v12, %v457_v58  ;;  %v515_v58 = vmul.f32 %v513_v46, %v1142_v24  ;;  %v527_v24 = vstv %s1261_s26 }
 0x39f   :  { %v426_v52 = vadd.f32 %v424_v6, %v412_v23  ;;  %v427_v31 = vadd.f32 %v425_v8, %v413_v11  ;;  %v462_v21 = vmul.f32 %v967_v53, %v461_v19  ;;  %v463_v55 = vmul.f32 %v960_v50, %v460_v18  ;;  %v477_v22 = vpop.permute.xlu1 %476 }
 0x3a0   :  { %v514_v11 = vmul.f32 %v513_v46, %v1166_v16 }
 0x3a1   :  { %v433_v1 = vadd.f32 %v431_v7, %v427_v31  ;;  %v432_v27 = vadd.f32 %v430_v17, %v426_v52  ;;  %v479_v28 = vpop.permute.xlu0 %478  ;;  %v466_v35 = vmul.f32 %v465_v26, %v462_v21  ;;  %v467_v36 = vmul.f32 %v465_v26, %v463_v55 }
 0x3a2   :  { %v480_v29 = vsel %vm173_vm8, %v477_v22, %v479_v28  ;;  %v481_v30 = vsel %vm173_vm8, %v479_v28, %v477_v22  ;;  %v541_v21 = vstv %s1266_s27  ;;  %v547_v26 = vstv %s1269_s28 }
 0x3a3   :  { %v447_v32 = vadd.f32 %v445_v60, %v433_v1  ;;  %v446_v33 = vadd.f32 %v444_v48, %v432_v27  ;;  %v533_v38 = vpop.permute.xlu1 %532  ;;  %v482_v43 = vmul.f32 %v1004_v5, %v480_v29  ;;  %v483_v44 = vmul.f32 %v963_v51, %v481_v30 }
 0x3a5   :  { %v468_v39 = vadd.f32 %v466_v35, %v446_v33  ;;  %v469_v42 = vadd.f32 %v467_v36, %v447_v32  ;;  %v521_v45 = vpop.permute.xlu0 %520  ;;  %v486_v61 = vmul.f32 %v485_v49, %v482_v43  ;;  %v487_v62 = vmul.f32 %v485_v49, %v483_v44 }
 0x3a7   :  { %v475_v47 = vadd.f32 %v473_v40, %v469_v42  ;;  %v474_v37 = vadd.f32 %v472_v41, %v468_v39  ;;  %v499_v54 = vpop.permute.xlu1 %498  ;;  %v548_v40 = vmul.f32 %v547_v26, %v1098_v63  ;;  %v549_v41 = vmul.f32 %v547_v26, %v1100_v0 }
 0x3a8   :  { %v502_v13 = vsel %vm144_vm7, %v499_v54, %v501_v56  ;;  %v503_v57 = vsel %vm144_vm7, %v501_v56, %v499_v54  ;;  %v561_v39 = vstv %s1283_s29  ;;  %v583_v42 = vstv %s1285_s30 }
 0x3a9   :  { %v504_v2 = vmul.f32 %v967_v53, %v503_v57  ;;  %v505_v3 = vmul.f32 %v960_v50, %v502_v13  ;;  %v535_v4 = vpop.permute.xlu0 %534  ;;  %v488_v7 = vadd.f32 %v486_v61, %v474_v37  ;;  %v489_v9 = vadd.f32 %v487_v62, %v475_v47 }
 0x3aa   :  { %v536_v6 = vsel %vm144_vm7, %v533_v38, %v535_v4  ;;  %v537_v8 = vsel %vm144_vm7, %v535_v4, %v533_v38  ;;  %v589_v13 = vstv %s1298_s4 }
 0x3ab   :  { %v508_v56 = vmul.f32 %v507_v14, %v504_v2  ;;  %v509_v10 = vmul.f32 %v507_v14, %v505_v3  ;;  %v519_v23 = vpop.permute.xlu1 %518  ;;  %v538_v19 = vmul.f32 %v967_v53, %v537_v8  ;;  %v539_v52 = vmul.f32 %v960_v50, %v536_v6 }
 0x3ac   :  { %v522_v12 = vsel %vm173_vm8, %v519_v23, %v521_v45  ;;  %v523_v15 = vsel %vm173_vm8, %v521_v45, %v519_v23  ;;  %v603_v2 = vstv %s1301_s5 }
 0x3ad   :  { %v510_v17 = vadd.f32 %v508_v56, %v488_v7  ;;  %v511_v18 = vadd.f32 %v509_v10, %v489_v9  ;;  %v555_v31 = vpop.permute.xlu0 %554  ;;  %v524_v55 = vmul.f32 %v1004_v5, %v522_v12  ;;  %v525_v22 = vmul.f32 %v963_v51, %v523_v15 }
 0x3ae   :  { %v542_v29 = vmul.f32 %v541_v21, %v538_v19  ;;  %v543_v30 = vmul.f32 %v541_v21, %v539_v52  ;;  %v591_v7 = vmul.f32 %v589_v13, %v1181_v34  ;;  %v590_v9 = vmul.f32 %v589_v13, %v1189_v20  ;;  %v717_v34 = vld [vmem:[#allocation2] sm:$0xff]  ;;  %v718_v20 = vld [vmem:[#allocation2 + $0x8] sm:$0xff] }
 0x3af   :  { %v516_v16 = vadd.f32 %v514_v11, %v510_v17  ;;  %v517_v59 = vadd.f32 %v515_v58, %v511_v18  ;;  %v553_v48 = vpop.permute.xlu1 %552  ;;  %v528_v60 = vmul.f32 %v527_v24, %v524_v55  ;;  %v529_v1 = vmul.f32 %v527_v24, %v525_v22  ;;  %v619_v17 = vld [vmem:[#allocation6] sm:$0xff]  ;;  %v620_v18 = vld [vmem:[#allocation6 + $0x8] sm:$0xff] }
 0x3b0   :  { %v556_v27 = vsel %vm173_vm8, %v553_v48, %v555_v31  ;;  %v557_v28 = vsel %vm173_vm8, %v555_v31, %v553_v48  ;;  %v614_v15 = vstv %s1319_s6  ;;  %v621_v19 = vstv %s1118_s17 }
 0x3b1   :  { %v577_v32 = vpop.permute.xlu0 %576  ;;  %v530_v33 = vadd.f32 %v528_v60, %v516_v16  ;;  %v531_v35 = vadd.f32 %v529_v1, %v517_v59  ;;  %v558_v36 = vmul.f32 %v1004_v5, %v556_v27  ;;  %v559_v38 = vmul.f32 %v963_v51, %v557_v28 }
 0x3b2   :  { %v623_v21 = vmul.f32 %v621_v19, %v620_v18  ;;  %v626_v16 = vstv %s701_s0 }
 0x3b3   :  { %v575_v43 = vpop.permute.xlu1 %574  ;;  %v544_v44 = vadd.f32 %v542_v29, %v530_v33  ;;  %v545_v45 = vadd.f32 %v543_v30, %v531_v35  ;;  %v562_v54 = vmul.f32 %v561_v39, %v558_v36  ;;  %v563_v14 = vmul.f32 %v561_v39, %v559_v38 }
 0x3b4   :  { %v578_v49 = vsel %vm144_vm7, %v575_v43, %v577_v32  ;;  %v579_v46 = vsel %vm144_vm7, %v577_v32, %v575_v43 }
 0x3b5   :  { %v580_v47 = vmul.f32 %v967_v53, %v579_v46  ;;  %v581_v37 = vmul.f32 %v960_v50, %v578_v49  ;;  %v550_v63 = vadd.f32 %v548_v40, %v544_v44  ;;  %v551_v0 = vadd.f32 %v549_v41, %v545_v45  ;;  %v597_v62 = vpop.permute.xlu0 %596 }
 0x3b7   :  { %v584_v57 = vmul.f32 %v583_v42, %v580_v47  ;;  %v585_v61 = vmul.f32 %v583_v42, %v581_v37  ;;  %v595_v3 = vpop.permute.xlu1 %594  ;;  %v564_v4 = vadd.f32 %v562_v54, %v550_v63  ;;  %v565_v58 = vadd.f32 %v563_v14, %v551_v0 }
 0x3b8   :  { %v598_v53 = vsel %vm173_vm8, %v595_v3, %v597_v62  ;;  %v599_v50 = vsel %vm173_vm8, %v597_v62, %v595_v3 }
 0x3b9   :  { %v600_v6 = vmul.f32 %v1004_v5, %v598_v53  ;;  %v601_v8 = vmul.f32 %v963_v51, %v599_v50  ;;  %v586_v56 = vadd.f32 %v584_v57, %v564_v4  ;;  %v587_v10 = vadd.f32 %v585_v61, %v565_v58 }
 0x3ba   :  { %v622_v51 = vmul.f32 %v621_v19, %v619_v17 }
 0x3bb   :  { %v604_v23 = vmul.f32 %v603_v2, %v600_v6  ;;  %v605_v11 = vmul.f32 %v603_v2, %v601_v8  ;;  %v592_v24 = vadd.f32 %v590_v9, %v586_v56  ;;  %v593_v12 = vadd.f32 %v591_v7, %v587_v10 }
 0x3bd   :  { %v606_v25 = vadd.f32 %v604_v23, %v592_v24  ;;  %v607_v52 = vadd.f32 %v605_v11, %v593_v12 }
 0x3bf   :  { %v615_v5 = vmul.f32 %v614_v15, %v606_v25  ;;  %v616_v31 = vmul.f32 %v614_v15, %v607_v52 }
 0x3c1   :  { %v617_v55 = vadd.f32 %v717_v34, %v615_v5  ;;  %v618_v22 = vadd.f32 %v718_v20, %v616_v31 }
 0x3c3   :  { %v624_v59 = vadd.f32 %v622_v51, %v617_v55  ;;  %v625_v26 = vadd.f32 %v623_v21, %v618_v22 }
 0x3c5   :  { %v627_v48 = vmul.f32 %v626_v16, %v624_v59  ;;  %v628_v60 = vmul.f32 %v626_v16, %v625_v26 }
 0x3c7   :  { %629 = vst [vmem:[#allocation9] sm:$0xff] %v627_v48  ;;  %630 = vst [vmem:[#allocation9 + $0x8] sm:$0xff] %v628_v60 }
 0x3c8   :  { %786 = shalt.err (!%p783_p11)
}
 0x3c9   :  { %s787_s12 = scalar_lea.hbm %s1348_s3, 256 }
 0x3ca   :  { %p788_p12 = scmp.ne.s32.totalorder %s1348_s3, %s787_s12  ;;  %p791_p13 = scmp.lt.u32.totalorder %s787_s12, %s1348_s3 }
 0x3cc   :  { %p793_p0 = pnand %p791_p13, %p788_p12 }
 0x3ce   :  { %796 = shalt.err (!%p793_p0)
}
 0x3cf   :  { %640 = dma.vmem_to_hbm [thread:$0]  %s638_s8, 256, %s1348_s3, [#allocation4]  }
 0x3d0   :  { %803 = dma.done.wait [#allocation4], 256  }
 0x3d1   :  { %804 = vsyncadd [#allocation4], 4294967040 }
 0x3d2   :  { %644 = vsyncpa [#allocation3], 1 }
 0x3d3   :  { %645 = vsyncpa [#allocation7], 1 }
 0x3d4   :  { %646 = vsyncpa [#allocation4], 1 }
 0x3d5   :  { %647 = vsyncpa [#allocation5], 1 }

</bundles_post_ra>
